<compile_context>
chip_gen: v6e
topology: v6e:2x2x1
jax: 0.10.0
libtpu: 0.0.40
codegen_flags: <defaults>
</compile_context>

<pallas_src>
import functools
import math

import jax
import jax.numpy as jnp
from jax.experimental import pallas as pl
from jax.experimental.pallas import tpu as pltpu

_LANE = 128
_SUBLANE = 8
_NEG_BIG = -1e30


def _round_up(x, m):
    return (x + m - 1) // m * m


def _dot(a, b):
    # MXU matmul with f32 accumulation; cast the activation to the weight dtype so a
    # bf16 weight cast (v6e/v7x) yields true low-precision MXU pushes.
    return jnp.dot(a.astype(b.dtype), b, preferred_element_type=jnp.float32)


def _vmem_limit(resident_bytes):
    # Generation-aware clamp: never ask for more than ~75% of the chip's physical
    # VMEM (v7x = 64 MiB, v5e/v6e = 128 MiB); keep headroom for double buffering.
    cap = 64 * 1024 * 1024
    try:
        info = pltpu.get_tpu_info()
        cap = int(getattr(info, "vmem_capacity_bytes", cap))
    except Exception:
        pass
    ceiling = (cap * 3) // 4
    want = max(16 * 1024 * 1024, 2 * int(resident_bytes) + (2 << 20))
    return int(min(ceiling, want))


# ---------------------------------------------------------------------------
# Kernel 1: attention (online softmax over S chunks) + multi-layer GRU cell.
# Grid: (num_s_chunks,), dimension_semantics ("arbitrary",).
# ---------------------------------------------------------------------------
def _decoder_core_kernel(num_layers, s_total, needs_mask, *refs):
    if num_layers > 1:
        (enc_ref,        # (St, Bp, Hp) current seq chunk
         state_ref,      # (L, Bp, Hp)
         emb_ref,        # (Bp, E)
         wa_enc_ref,     # (Hp, A)
         wa_dec_ref,     # (Hp, A)
         wa_vt_ref,      # (A, 1)
         w_ih0_ref,      # (E+Hp, 3Hp)  gates lane-tile aligned: [g*Hp : g*Hp+H]
         w_hh0_ref,      # (Hp, 3Hp)
         b_ih0_ref,      # (1, 3Hp)
         b_hh0_ref,      # (1, 3Hp)
         w_ih_ref,       # (L-1, Hp, 3Hp)
         w_hh_ref,       # (L-1, Hp, 3Hp)
         b_ih_ref,       # (L-1, 1, 3Hp)
         b_hh_ref,       # (L-1, 1, 3Hp)
         newstate_ref,   # (L, Bp, Hp)  out
         hlast_ref,      # (Bp, Hp)     out (last layer's new hidden)
         m_sc, l_sc, c_sc) = refs
    else:
        (enc_ref, state_ref, emb_ref, wa_enc_ref, wa_dec_ref, wa_vt_ref,
         w_ih0_ref, w_hh0_ref, b_ih0_ref, b_hh0_ref,
         newstate_ref, hlast_ref, m_sc, l_sc, c_sc) = refs
        w_ih_ref = w_hh_ref = b_ih_ref = b_hh_ref = None

    j = pl.program_id(0)
    n_chunks = pl.num_programs(0)
    St, Bp, Hp = enc_ref.shape
    A = wa_enc_ref.shape[1]

    @pl.when(j == 0)
    def _():
        m_sc[...] = jnp.full_like(m_sc, _NEG_BIG)
        l_sc[...] = jnp.zeros_like(l_sc)
        c_sc[...] = jnp.zeros_like(c_sc)

    # ---- attention on this chunk: e = v . tanh(W_enc @ enc + W_dec @ dec) ----
    enc = enc_ref[...]                                           # (St, Bp, Hp)
    dec = state_ref[num_layers - 1]                              # (Bp, Hp) == state[-1]

    enc_proj = _dot(enc.reshape(St * Bp, Hp), wa_enc_ref[...])   # (St*Bp, A)  MXU
    dec_proj = _dot(dec, wa_dec_ref[...])                        # (Bp, A)     MXU
    pre = jnp.tanh(enc_proj.reshape(St, Bp, A) + dec_proj[None]) # EUP tanh, f32
    # score reduce on the MXU (otherwise idle) instead of VPU mul + XLU reduce:
    scores = _dot(pre.reshape(St * Bp, A), wa_vt_ref[...]).reshape(St, Bp, 1)

    if needs_mask:  # tail chunk has padded (zero) rows beyond the true seq length
        pos = j * St + jax.lax.broadcasted_iota(jnp.int32, (St, Bp, 1), 0)
        scores = jnp.where(pos < s_total, scores, _NEG_BIG)

    # online softmax accumulation (running max / denom / weighted context)
    m_prev = m_sc[...]                                           # (Bp, 1)
    m_new = jnp.maximum(m_prev, jnp.max(scores, axis=0))         # (Bp, 1)
    corr = jnp.exp(m_prev - m_new)                               # (Bp, 1)
    p = jnp.exp(scores - m_new[None])                            # (St, Bp, 1)
    m_sc[...] = m_new
    l_sc[...] = corr * l_sc[...] + jnp.sum(p, axis=0)
    c_sc[...] = corr * c_sc[...] + jnp.sum(p * enc.astype(jnp.float32), axis=0)

    # ---- final chunk: normalize context, run the GRU stack, store outputs ----
    @pl.when(j == n_chunks - 1)
    def _():
        c = c_sc[...] * pl.reciprocal(l_sc[...], approx=True)     # (Bp, Hp)  EUP recip
        emb = emb_ref[...].astype(jnp.float32)
        x0 = jnp.concatenate([emb, c], axis=1)                    # (Bp, E + Hp)

        def gru_cell(x, h_prev, w_ih, w_hh, b_ih, b_hh):
            h_prev = h_prev.astype(jnp.float32)
            gi = _dot(x, w_ih) + b_ih.astype(jnp.float32)         # (Bp, 3Hp)
            gh = _dot(h_prev, w_hh) + b_hh.astype(jnp.float32)    # (Bp, 3Hp)
            # gate slices are whole-lane-tile views (Hp % 128 == 0)
            r = jax.nn.sigmoid(gi[:, 0:Hp] + gh[:, 0:Hp])
            z = jax.nn.sigmoid(gi[:, Hp:2 * Hp] + gh[:, Hp:2 * Hp])
            n = jnp.tanh(gi[:, 2 * Hp:3 * Hp] + r * gh[:, 2 * Hp:3 * Hp])
            return (1.0 - z) * n + z * h_prev

        h = gru_cell(x0, state_ref[0], w_ih0_ref[...], w_hh0_ref[...],
                     b_ih0_ref[...], b_hh0_ref[...])
        newstate_ref[0] = h
        for l in range(1, num_layers):
            h = gru_cell(h, state_ref[l], w_ih_ref[l - 1], w_hh_ref[l - 1],
                         b_ih_ref[l - 1], b_hh_ref[l - 1])
            newstate_ref[l] = h
        hlast_ref[...] = h


# ---------------------------------------------------------------------------
# Kernel 2: lane-dense output projection, gridded over vocab tiles.
# ---------------------------------------------------------------------------
def _out_proj_kernel(h_ref, w_ref, b_ref, o_ref):
    o_ref[...] = _dot(h_ref[...], w_ref[...]) + b_ref[...].astype(jnp.float32)


def decoder_step(cur_input, state, enc_states, params, *,
                 weight_dtype=jnp.float32, tile_v=512, s_tile=128,
                 use_core_parallel=False, wout_buffers=2):
    """One decoder step. Returns (logits (B, V), new_state (L, B, H)).

    tile_v:     vocab tile width (forced to a multiple of 256; sweep 512-1024).
    s_tile:     attention seq-chunk length (grid axis of the core kernel).
    use_core_parallel: set True on v7x to shard vocab tiles across both TensorCores.
    wout_buffers: pipeline depth for the w_out stream (3 can help on v7x).
    """
    emb = params['embedding'][cur_input]            # (B, E) embedding gather (XLA glue)
    L, B, H = state.shape
    S = enc_states.shape[0]
    E = emb.shape[1]
    V = params['w_out'].shape[1]
    A = params['wa_enc'].shape[1]

    f32 = jnp.float32
    wd = weight_dtype

    Hp = _round_up(H, _LANE)          # lane-tile-aligned hidden dim
    Bp = _round_up(B, _SUBLANE)       # f32 sublane granule
    tile = _round_up(max(2 * _LANE, min(tile_v, _round_up(V, 2 * _LANE))), 2 * _LANE)
    Vp = _round_up(V, tile)
    St = max(1, min(s_tile, S))
    Sp = _round_up(S, St)
    n_chunks = Sp // St
    needs_mask = Sp != S

    def _pad_to(x, shape):
        return jnp.pad(x, [(0, t - s) for s, t in zip(x.shape, shape)])

    def _regate(w, rows_p):
        # (..., R, 3H) -> (..., rows_p, 3Hp): gate g cols [g*H:(g+1)*H] -> [g*Hp:g*Hp+H]
        *lead, R, _ = w.shape
        out = jnp.zeros((*lead, rows_p, 3 * Hp), w.dtype)
        for g in range(3):
            out = out.at[..., :R, g * Hp:g * Hp + H].set(w[..., :, g * H:(g + 1) * H])
        return out

    # ---- repack / pad operands (zero padding is exact: padded hidden cols stay 0) --
    # NOTE: in a real serving loop this repacking would be done once, offline.
    enc_p = _pad_to(enc_states, (Sp, Bp, Hp)).astype(wd)
    state_p = _pad_to(state, (L, Bp, Hp)).astype(f32)
    emb_p = _pad_to(emb, (Bp, E)).astype(wd)

    wa_enc_p = _pad_to(params['wa_enc'], (Hp, A)).astype(wd)
    wa_dec_p = _pad_to(params['wa_dec'], (Hp, A)).astype(wd)
    wa_vt = params['wa_v'].T.astype(wd)                                   # (A, 1)

    w_ih0 = _regate(params['w_ih0'], E + Hp).astype(wd)
    w_hh0 = _regate(params['w_hh0'], Hp).astype(wd)
    b_ih0 = _regate(params['b_ih0'], 1).astype(f32)
    b_hh0 = _regate(params['b_hh0'], 1).astype(f32)

    core_args = [enc_p, state_p, emb_p, wa_enc_p, wa_dec_p, wa_vt,
                 w_ih0, w_hh0, b_ih0, b_hh0]
    if L > 1:   # only ship the "rest" GRU weights when they are actually used
        core_args += [_regate(params['w_ih_rest'][:L - 1], Hp).astype(wd),
                      _regate(params['w_hh_rest'][:L - 1], Hp).astype(wd),
                      _regate(params['b_ih_rest'][:L - 1], 1).astype(f32),
                      _regate(params['b_hh_rest'][:L - 1], 1).astype(f32)]

    w_out_p = _pad_to(params['w_out'], (Hp, Vp)).astype(wd)
    b_out_p = _pad_to(params['b_out'], (1, Vp)).astype(f32)

    # ---- core pallas_call: grid over seq chunks -------------------------------
    def whole(x):
        return pl.BlockSpec(x.shape, lambda j, _n=x.ndim: (0,) * _n)

    enc_spec = pl.BlockSpec((St, Bp, Hp), lambda j: (j, 0, 0))
    in_specs = [enc_spec] + [whole(a) for a in core_args[1:]]
    out_specs = (pl.BlockSpec((L, Bp, Hp), lambda j: (0, 0, 0)),
                 pl.BlockSpec((Bp, Hp), lambda j: (0, 0)))

    chunk_bytes = St * Bp * Hp * enc_p.dtype.itemsize
    other_bytes = sum(int(a.size) * a.dtype.itemsize for a in core_args[1:])
    out_bytes = (L + 1) * Bp * Hp * 4
    scratch_bytes = (2 * Bp + Bp * Hp) * 4
    core_resident = 2 * chunk_bytes + other_bytes + out_bytes + scratch_bytes

    core_flops = (n_chunks * (2 * St * Bp * Hp * A + 2 * Bp * Hp * A
                              + 2 * St * Bp * A + 4 * St * Bp * Hp)
                  + 2 * Bp * (E + Hp) * 3 * Hp + 2 * Bp * Hp * 3 * Hp
                  + max(L - 1, 0) * 4 * Bp * Hp * 3 * Hp + 12 * L * Bp * Hp)
    core_trans = Sp * Bp * A + 2 * Sp * Bp + 3 * L * Bp * Hp
    core_bytes = int(enc_p.size) * enc_p.dtype.itemsize + other_bytes + out_bytes

    new_state_p, h_last = pl.pallas_call(
        functools.partial(_decoder_core_kernel, L, S, needs_mask),
        out_shape=(jax.ShapeDtypeStruct((L, Bp, Hp), f32),
                   jax.ShapeDtypeStruct((Bp, Hp), f32)),
        grid=(n_chunks,),
        in_specs=in_specs,
        out_specs=out_specs,
        scratch_shapes=[pltpu.VMEM((Bp, 1), f32),     # running max
                        pltpu.VMEM((Bp, 1), f32),     # running denom
                        pltpu.VMEM((Bp, Hp), f32)],   # running (unnormalized) context
        compiler_params=pltpu.CompilerParams(
            dimension_semantics=("arbitrary",),
            vmem_limit_bytes=_vmem_limit(core_resident)),
        cost_estimate=pl.CostEstimate(flops=int(core_flops),
                                      transcendentals=int(core_trans),
                                      bytes_accessed=int(core_bytes)),
    )(*core_args)

    # ---- output projection: grid over vocab tiles ------------------------------
    # TODO(synk): a cross-call w_out prefetch (P10) or fusing the projection into the
    # core call would hide the HBM round-trip + second launch on latency-bound decode.
    nv = Vp // tile
    if wout_buffers != 2:
        w_spec = pl.BlockSpec((Hp, tile), lambda j: (0, j),
                              pipeline_mode=pl.Buffered(wout_buffers))
    else:
        w_spec = pl.BlockSpec((Hp, tile), lambda j: (0, j))
    proj_dims = (pltpu.CORE_PARALLEL if use_core_parallel else "parallel",)

    proj_resident = (Bp * Hp * 4
                     + max(wout_buffers, 2) * (Hp * tile * w_out_p.dtype.itemsize
                                               + tile * 4 + Bp * tile * 4))
    proj_bytes = (Bp * Hp * 4 + int(w_out_p.size) * w_out_p.dtype.itemsize
                  + Vp * 4 + Bp * Vp * 4)

    logits_p = pl.pallas_call(
        _out_proj_kernel,
        out_shape=jax.ShapeDtypeStruct((Bp, Vp), f32),
        grid=(nv,),
        in_specs=[pl.BlockSpec((Bp, Hp), lambda j: (0, 0)),
                  w_spec,
                  pl.BlockSpec((1, tile), lambda j: (0, j))],
        out_specs=pl.BlockSpec((Bp, tile), lambda j: (0, j)),
        compiler_params=pltpu.CompilerParams(
            dimension_semantics=proj_dims,
            vmem_limit_bytes=_vmem_limit(proj_resident)),
        cost_estimate=pl.CostEstimate(flops=int(2 * Bp * Hp * Vp), transcendentals=0,
                                      bytes_accessed=int(proj_bytes)),
    )(h_last, w_out_p, b_out_p)

    return logits_p[:B, :V], new_state_p[:, :B, :H]


def init_params(key, vocab_size, embed_size, num_hiddens, num_layers, attention_size):
    H, E, A, V, L = num_hiddens, embed_size, attention_size, vocab_size, num_layers
    keys = jax.random.split(key, 16)

    def u(k, shape, fan_in):
        b = 1.0 / math.sqrt(fan_in)
        return jax.random.uniform(k, shape, jnp.float32, -b, b)

    nrest = max(L - 1, 1)
    return dict(
        embedding=jax.random.normal(keys[0], (V, E), jnp.float32),
        # attention: Linear(2H -> A, bias=False) split into enc/dec halves; Linear(A -> 1)
        wa_enc=u(keys[1], (H, A), 2 * H),
        wa_dec=u(keys[2], (H, A), 2 * H),
        wa_v=u(keys[3], (1, A), A),
        # GRU layer 0 (input = concat(emb, c), size E + H); gates fused (r, z, n)
        w_ih0=u(keys[4], (E + H, 3 * H), H),
        w_hh0=u(keys[5], (H, 3 * H), H),
        b_ih0=u(keys[6], (1, 3 * H), H),
        b_hh0=u(keys[7], (1, 3 * H), H),
        # GRU layers 1..L-1
        w_ih_rest=u(keys[8], (nrest, H, 3 * H), H),
        w_hh_rest=u(keys[9], (nrest, H, 3 * H), H),
        b_ih_rest=u(keys[10], (nrest, 1, 3 * H), H),
        b_hh_rest=u(keys[11], (nrest, 1, 3 * H), H),
        # output Linear(H -> V)
        w_out=u(keys[12], (H, V), H),
        b_out=u(keys[13], (1, V), H),
    )


def decoder_ref(cur_input, state, enc_states, params):
    """Pure-JAX reference mirroring the PyTorch forward semantics."""
    emb = params['embedding'][cur_input]
    dec = state[-1]
    H = state.shape[-1]
    pre = jnp.tanh(jnp.einsum('sbh,ha->sba', enc_states, params['wa_enc'])
                   + (dec @ params['wa_dec'])[None])
    e = jnp.einsum('sba,a->sb', pre, params['wa_v'][0])
    alpha = jax.nn.softmax(e, axis=0)
    c = jnp.sum(alpha[..., None] * enc_states, axis=0)

    def gru_cell(x, h_prev, w_ih, w_hh, b_ih, b_hh):
        gi = x @ w_ih + b_ih
        gh = h_prev @ w_hh + b_hh
        r = jax.nn.sigmoid(gi[:, :H] + gh[:, :H])
        z = jax.nn.sigmoid(gi[:, H:2 * H] + gh[:, H:2 * H])
        n = jnp.tanh(gi[:, 2 * H:] + r * gh[:, 2 * H:])
        return (1.0 - z) * n + z * h_prev

    h = gru_cell(jnp.concatenate([emb, c], axis=1), state[0],
                 params['w_ih0'], params['w_hh0'], params['b_ih0'], params['b_hh0'])
    new_states = [h]
    for l in range(1, state.shape[0]):
        h = gru_cell(h, state[l], params['w_ih_rest'][l - 1], params['w_hh_rest'][l - 1],
                     params['b_ih_rest'][l - 1], params['b_hh_rest'][l - 1])
        new_states.append(h)
    out = h @ params['w_out'] + params['b_out']
    return out, jnp.stack(new_states)


if __name__ == "__main__":
    # The PyTorch module requires embed_size == num_hiddens (GRU input = 2*embed_size).
    vocab_size, embed_size, num_hiddens = 20, 32, 32
    num_layers, attention_size = 2, 16
    batch, seq_len = 4, 8

    key = jax.random.PRNGKey(0)
    kp, k1, k2, k3 = jax.random.split(key, 4)
    params = init_params(kp, vocab_size, embed_size, num_hiddens, num_layers, attention_size)

    cur_input = jax.random.randint(k1, (batch,), 0, vocab_size)
    state = jax.random.normal(k2, (num_layers, batch, num_hiddens), jnp.float32)
    enc_states = jax.random.normal(k3, (seq_len, batch, num_hiddens), jnp.float32)

    ref_out, ref_state = decoder_ref(cur_input, state, enc_states, params)

    # f32 path; s_tile=3 exercises the multi-chunk online-softmax grid + tail masking.
    out, new_state = decoder_step(cur_input, state, enc_states, params,
                                  weight_dtype=jnp.float32, s_tile=3)
    jax.block_until_ready((out, new_state))
    assert out.shape == (batch, vocab_size) and new_state.shape == state.shape
    assert bool(jnp.allclose(out, ref_out, rtol=5e-3, atol=5e-3))
    assert bool(jnp.allclose(new_state, ref_state, rtol=5e-3, atol=5e-3))

    # bf16-weight path (v6e/v7x recommendation: bf16 MXU operands, f32 accumulation),
    # default single-chunk attention tiling.
    out16, new_state16 = decoder_step(cur_input, state, enc_states, params,
                                      weight_dtype=jnp.bfloat16)
    jax.block_until_ready((out16, new_state16))
    assert bool(jnp.allclose(out16, ref_out, rtol=1e-1, atol=1e-1))
    assert bool(jnp.allclose(new_state16, ref_state, rtol=1e-1, atol=1e-1))

    print("KERNEL_OK")
</pallas_src>

<mosaic_0001>
module attributes {stable_mosaic.version = 11 : i64} {
  func.func @_decoder_core_kernel(%arg0: i32, %arg1: memref<3x8x128xf32, #tpu.memory_space<vmem>>, %arg2: memref<2x8x128xf32, #tpu.memory_space<vmem>>, %arg3: memref<8x32xf32, #tpu.memory_space<vmem>>, %arg4: memref<128x16xf32, #tpu.memory_space<vmem>>, %arg5: memref<128x16xf32, #tpu.memory_space<vmem>>, %arg6: memref<16x1xf32, #tpu.memory_space<vmem>>, %arg7: memref<160x384xf32, #tpu.memory_space<vmem>>, %arg8: memref<128x384xf32, #tpu.memory_space<vmem>>, %arg9: memref<1x384xf32, #tpu.memory_space<vmem>>, %arg10: memref<1x384xf32, #tpu.memory_space<vmem>>, %arg11: memref<1x128x384xf32, #tpu.memory_space<vmem>>, %arg12: memref<1x128x384xf32, #tpu.memory_space<vmem>>, %arg13: memref<1x1x384xf32, #tpu.memory_space<vmem>>, %arg14: memref<1x1x384xf32, #tpu.memory_space<vmem>>, %arg15: memref<2x8x128xf32, #tpu.memory_space<vmem>>, %arg16: memref<8x128xf32, #tpu.memory_space<vmem>>, %arg17: memref<8x1xf32, #tpu.memory_space<vmem>>, %arg18: memref<8x1xf32, #tpu.memory_space<vmem>>, %arg19: memref<8x128xf32, #tpu.memory_space<vmem>>) attributes {dimension_semantics = [#tpu.dimension_semantics<arbitrary>], iteration_bounds = array<i64: 3>, scalar_prefetch = 0 : i64, scratch_operands = 3 : i64, tpu.core_type = #tpu.core_type<tc>, window_params = [{transform_indices = @transform_0, window_bounds = array<i64: 3, 8, 128>}, {pipeline_mode = #tpu.pipeline_mode<synchronous>, transform_indices = @transform_1, window_bounds = array<i64: 2, 8, 128>}, {pipeline_mode = #tpu.pipeline_mode<synchronous>, transform_indices = @transform_2, window_bounds = array<i64: 8, 32>}, {pipeline_mode = #tpu.pipeline_mode<synchronous>, transform_indices = @transform_3, window_bounds = array<i64: 128, 16>}, {pipeline_mode = #tpu.pipeline_mode<synchronous>, transform_indices = @transform_4, window_bounds = array<i64: 128, 16>}, {pipeline_mode = #tpu.pipeline_mode<synchronous>, transform_indices = @transform_5, window_bounds = array<i64: 16, 1>}, {pipeline_mode = #tpu.pipeline_mode<synchronous>, transform_indices = @transform_6, window_bounds = array<i64: 160, 384>}, {pipeline_mode = #tpu.pipeline_mode<synchronous>, transform_indices = @transform_7, window_bounds = array<i64: 128, 384>}, {pipeline_mode = #tpu.pipeline_mode<synchronous>, transform_indices = @transform_8, window_bounds = array<i64: 1, 384>}, {pipeline_mode = #tpu.pipeline_mode<synchronous>, transform_indices = @transform_9, window_bounds = array<i64: 1, 384>}, {pipeline_mode = #tpu.pipeline_mode<synchronous>, transform_indices = @transform_10, window_bounds = array<i64: 1, 128, 384>}, {pipeline_mode = #tpu.pipeline_mode<synchronous>, transform_indices = @transform_11, window_bounds = array<i64: 1, 128, 384>}, {pipeline_mode = #tpu.pipeline_mode<synchronous>, transform_indices = @transform_12, window_bounds = array<i64: 1, 1, 384>}, {pipeline_mode = #tpu.pipeline_mode<synchronous>, transform_indices = @transform_13, window_bounds = array<i64: 1, 1, 384>}, {pipeline_mode = #tpu.pipeline_mode<synchronous>, transform_indices = @transform_14, window_bounds = array<i64: 2, 8, 128>}, {pipeline_mode = #tpu.pipeline_mode<synchronous>, transform_indices = @transform_15, window_bounds = array<i64: 8, 128>}]} {
    %c0_i32 = arith.constant 0 : i32
    %0 = arith.cmpi eq, %arg0, %c0_i32 : i32
    %1 = arith.extui %0 : i1 to i32
    %c0_i32_0 = arith.constant 0 : i32
    %2 = arith.cmpi ne, %1, %c0_i32_0 : i32
    scf.if %2 {
      %cst_30 = arith.constant -1.000000e+30 : f32
      %54 = vector.broadcast %cst_30 : f32 to vector<8x1xf32>
      %c0_31 = arith.constant 0 : index
      %c0_32 = arith.constant 0 : index
      %55 = vector.load %arg17[%c0_31, %c0_32] : memref<8x1xf32, #tpu.memory_space<vmem>>, vector<8x1xf32>
      tpu.vector_store %arg17[%c0_31, %c0_32], %54 {strides = array<i32>} : memref<8x1xf32, #tpu.memory_space<vmem>>, vector<8x1xf32>,
      %cst_33 = arith.constant 0.000000e+00 : f32
      %56 = vector.broadcast %cst_33 : f32 to vector<8x1xf32>
      %c0_34 = arith.constant 0 : index
      %c0_35 = arith.constant 0 : index
      %57 = vector.load %arg18[%c0_34, %c0_35] : memref<8x1xf32, #tpu.memory_space<vmem>>, vector<8x1xf32>
      tpu.vector_store %arg18[%c0_34, %c0_35], %56 {strides = array<i32>} : memref<8x1xf32, #tpu.memory_space<vmem>>, vector<8x1xf32>,
      %cst_36 = arith.constant 0.000000e+00 : f32
      %58 = vector.broadcast %cst_36 : f32 to vector<8x128xf32>
      %c0_37 = arith.constant 0 : index
      %c0_38 = arith.constant 0 : index
      %59 = vector.load %arg19[%c0_37, %c0_38] : memref<8x128xf32, #tpu.memory_space<vmem>>, vector<8x128xf32>
      tpu.vector_store %arg19[%c0_37, %c0_38], %58 {strides = array<i32>} : memref<8x128xf32, #tpu.memory_space<vmem>>, vector<8x128xf32>,
    } else {
    }
    %c0 = arith.constant 0 : index
    %c0_1 = arith.constant 0 : index
    %c0_2 = arith.constant 0 : index
    %3 = vector.load %arg1[%c0, %c0_1, %c0_2] : memref<3x8x128xf32, #tpu.memory_space<vmem>>, vector<3x8x128xf32>
    %c1 = arith.constant 1 : index
    %c0_3 = arith.constant 0 : index
    %c0_4 = arith.constant 0 : index
    %4 = vector.load %arg2[%c1, %c0_3, %c0_4] : memref<2x8x128xf32, #tpu.memory_space<vmem>>, vector<1x8x128xf32>
    %5 = vector.shape_cast %4 : vector<1x8x128xf32> to vector<8x128xf32>
    %6 = vector.shape_cast %3 : vector<3x8x128xf32> to vector<24x128xf32>
    %c0_5 = arith.constant 0 : index
    %c0_6 = arith.constant 0 : index
    %7 = vector.load %arg4[%c0_5, %c0_6] : memref<128x16xf32, #tpu.memory_space<vmem>>, vector<128x16xf32>
    %cst = arith.constant dense<0.000000e+00> : vector<24x16xf32>
    %8 = tpu.matmul %6, %7, %cst {dimension_numbers = #tpu.dot_dimension_numbers<[1], [0], [0], [1], [0, 0, 1, 1], [], []>} : vector<24x128xf32>, vector<128x16xf32>, vector<24x16xf32> -> vector<24x16xf32>
    %c0_7 = arith.constant 0 : index
    %c0_8 = arith.constant 0 : index
    %9 = vector.load %arg5[%c0_7, %c0_8] : memref<128x16xf32, #tpu.memory_space<vmem>>, vector<128x16xf32>
    %cst_9 = arith.constant dense<0.000000e+00> : vector<8x16xf32>
    %10 = tpu.matmul %5, %9, %cst_9 {dimension_numbers = #tpu.dot_dimension_numbers<[1], [0], [0], [1], [0, 0, 1, 1], [], []>} : vector<8x128xf32>, vector<128x16xf32>, vector<8x16xf32> -> vector<8x16xf32>
    %11 = vector.shape_cast %8 : vector<24x16xf32> to vector<3x8x16xf32>
    %12 = vector.shape_cast %10 : vector<8x16xf32> to vector<1x8x16xf32>
    %13 = vector.broadcast %12 : vector<1x8x16xf32> to vector<3x8x16xf32>
    %14 = arith.addf %11, %13 : vector<3x8x16xf32>
    %15 = math.tanh %14 : vector<3x8x16xf32>
    %16 = vector.shape_cast %15 : vector<3x8x16xf32> to vector<24x16xf32>
    %c0_10 = arith.constant 0 : index
    %c0_11 = arith.constant 0 : index
    %17 = vector.load %arg6[%c0_10, %c0_11] : memref<16x1xf32, #tpu.memory_space<vmem>>, vector<16x1xf32>
    %cst_12 = arith.constant dense<0.000000e+00> : vector<24x1xf32>
    %18 = tpu.matmul %16, %17, %cst_12 {dimension_numbers = #tpu.dot_dimension_numbers<[1], [0], [0], [1], [0, 0, 1, 1], [], []>} : vector<24x16xf32>, vector<16x1xf32>, vector<24x1xf32> -> vector<24x1xf32>
    %19 = vector.shape_cast %18 : vector<24x1xf32> to vector<3x8x1xf32>
    %c3_i32 = arith.constant 3 : i32
    %20 = arith.muli %arg0, %c3_i32 : i32
    %21 = tpu.iota {dimensions = array<i32: 0>} : vector<3x8x1xi32>
    %22 = vector.broadcast %20 : i32 to vector<3x8x1xi32>
    %23 = arith.addi %22, %21 : vector<3x8x1xi32>
    %c8_i32 = arith.constant 8 : i32
    %24 = vector.broadcast %c8_i32 : i32 to vector<3x8x1xi32>
    %25 = arith.cmpi slt, %23, %24 : vector<3x8x1xi32>
    %cst_13 = arith.constant -1.000000e+30 : f32
    %26 = vector.broadcast %cst_13 : f32 to vector<3x8x1xf32>
    %27 = arith.select %25, %19, %26 : vector<3x8x1xi1>, vector<3x8x1xf32>
    %c0_14 = arith.constant 0 : index
    %c0_15 = arith.constant 0 : index
    %28 = vector.load %arg17[%c0_14, %c0_15] : memref<8x1xf32, #tpu.memory_space<vmem>>, vector<8x1xf32>
    %cst_16 = arith.constant dense<0xFF800000> : vector<8x1xf32>
    %29 = vector.multi_reduction <maximumf>, %27, %cst_16 [0] : vector<3x8x1xf32> to vector<8x1xf32>
    %30 = arith.maximumf %28, %29 : vector<8x1xf32>
    %31 = arith.subf %28, %30 : vector<8x1xf32>
    %32 = math.exp %31 : vector<8x1xf32>
    %33 = vector.shape_cast %30 : vector<8x1xf32> to vector<1x8x1xf32>
    %34 = vector.broadcast %33 : vector<1x8x1xf32> to vector<3x8x1xf32>
    %35 = arith.subf %27, %34 : vector<3x8x1xf32>
    %36 = math.exp %35 : vector<3x8x1xf32>
    %c0_17 = arith.constant 0 : index
    %c0_18 = arith.constant 0 : index
    %37 = vector.load %arg17[%c0_17, %c0_18] : memref<8x1xf32, #tpu.memory_space<vmem>>, vector<8x1xf32>
    tpu.vector_store %arg17[%c0_17, %c0_18], %30 {strides = array<i32>} : memref<8x1xf32, #tpu.memory_space<vmem>>, vector<8x1xf32>,
    %c0_19 = arith.constant 0 : index
    %c0_20 = arith.constant 0 : index
    %38 = vector.load %arg18[%c0_19, %c0_20] : memref<8x1xf32, #tpu.memory_space<vmem>>, vector<8x1xf32>
    %39 = arith.mulf %32, %38 : vector<8x1xf32>
    %cst_21 = arith.constant dense<0.000000e+00> : vector<8x1xf32>
    %40 = vector.multi_reduction <add>, %36, %cst_21 [0] : vector<3x8x1xf32> to vector<8x1xf32>
    %41 = arith.addf %39, %40 : vector<8x1xf32>
    %c0_22 = arith.constant 0 : index
    %c0_23 = arith.constant 0 : index
    %42 = vector.load %arg18[%c0_22, %c0_23] : memref<8x1xf32, #tpu.memory_space<vmem>>, vector<8x1xf32>
    tpu.vector_store %arg18[%c0_22, %c0_23], %41 {strides = array<i32>} : memref<8x1xf32, #tpu.memory_space<vmem>>, vector<8x1xf32>,
    %c0_24 = arith.constant 0 : index
    %c0_25 = arith.constant 0 : index
    %43 = vector.load %arg19[%c0_24, %c0_25] : memref<8x128xf32, #tpu.memory_space<vmem>>, vector<8x128xf32>
    %44 = vector.broadcast %32 : vector<8x1xf32> to vector<8x128xf32>
    %45 = arith.mulf %44, %43 : vector<8x128xf32>
    %46 = vector.broadcast %36 : vector<3x8x1xf32> to vector<3x8x128xf32>
    %47 = arith.mulf %46, %3 : vector<3x8x128xf32>
    %cst_26 = arith.constant dense<0.000000e+00> : vector<8x128xf32>
    %48 = vector.multi_reduction <add>, %47, %cst_26 [0] : vector<3x8x128xf32> to vector<8x128xf32>
    %49 = arith.addf %45, %48 : vector<8x128xf32>
    %c0_27 = arith.constant 0 : index
    %c0_28 = arith.constant 0 : index
    %50 = vector.load %arg19[%c0_27, %c0_28] : memref<8x128xf32, #tpu.memory_space<vmem>>, vector<8x128xf32>
    tpu.vector_store %arg19[%c0_27, %c0_28], %49 {strides = array<i32>} : memref<8x128xf32, #tpu.memory_space<vmem>>, vector<8x128xf32>,
    %c2_i32 = arith.constant 2 : i32
    %51 = arith.cmpi eq, %arg0, %c2_i32 : i32
    %52 = arith.extui %51 : i1 to i32
    %c0_i32_29 = arith.constant 0 : i32
    %53 = arith.cmpi ne, %52, %c0_i32_29 : i32
    scf.if %53 {
      %c0_30 = arith.constant 0 : index
      %c0_31 = arith.constant 0 : index
      %54 = vector.load %arg19[%c0_30, %c0_31] : memref<8x128xf32, #tpu.memory_space<vmem>>, vector<8x128xf32>
      %c0_32 = arith.constant 0 : index
      %c0_33 = arith.constant 0 : index
      %55 = vector.load %arg18[%c0_32, %c0_33] : memref<8x1xf32, #tpu.memory_space<vmem>>, vector<8x1xf32>
      %56 = tpu.reciprocal %55 {approx = true} : vector<8x1xf32> -> vector<8x1xf32>
      %57 = vector.broadcast %56 : vector<8x1xf32> to vector<8x128xf32>
      %58 = arith.mulf %54, %57 : vector<8x128xf32>
      %c0_34 = arith.constant 0 : index
      %c0_35 = arith.constant 0 : index
      %59 = vector.load %arg3[%c0_34, %c0_35] : memref<8x32xf32, #tpu.memory_space<vmem>>, vector<8x32xf32>
      %60 = tpu.concatenate %59, %58 in 1 : vector<8x32xf32>, vector<8x128xf32> -> vector<8x160xf32>
      %c0_36 = arith.constant 0 : index
      %c0_37 = arith.constant 0 : index
      %c0_38 = arith.constant 0 : index
      %61 = vector.load %arg2[%c0_36, %c0_37, %c0_38] : memref<2x8x128xf32, #tpu.memory_space<vmem>>, vector<1x8x128xf32>
      %62 = vector.shape_cast %61 : vector<1x8x128xf32> to vector<8x128xf32>
      %c0_39 = arith.constant 0 : index
      %c0_40 = arith.constant 0 : index
      %63 = vector.load %arg7[%c0_39, %c0_40] : memref<160x384xf32, #tpu.memory_space<vmem>>, vector<160x384xf32>
      %c0_41 = arith.constant 0 : index
      %c0_42 = arith.constant 0 : index
      %64 = vector.load %arg8[%c0_41, %c0_42] : memref<128x384xf32, #tpu.memory_space<vmem>>, vector<128x384xf32>
      %c0_43 = arith.constant 0 : index
      %c0_44 = arith.constant 0 : index
      %65 = vector.load %arg9[%c0_43, %c0_44] : memref<1x384xf32, #tpu.memory_space<vmem>>, vector<1x384xf32>
      %c0_45 = arith.constant 0 : index
      %c0_46 = arith.constant 0 : index
      %66 = vector.load %arg10[%c0_45, %c0_46] : memref<1x384xf32, #tpu.memory_space<vmem>>, vector<1x384xf32>
      %cst_47 = arith.constant dense<0.000000e+00> : vector<8x384xf32>
      %67 = tpu.matmul %60, %63, %cst_47 {dimension_numbers = #tpu.dot_dimension_numbers<[1], [0], [0], [1], [0, 0, 1, 1], [], []>} : vector<8x160xf32>, vector<160x384xf32>, vector<8x384xf32> -> vector<8x384xf32>
      %68 = vector.broadcast %65 : vector<1x384xf32> to vector<8x384xf32>
      %69 = arith.addf %67, %68 : vector<8x384xf32>
      %cst_48 = arith.constant dense<0.000000e+00> : vector<8x384xf32>
      %70 = tpu.matmul %62, %64, %cst_48 {dimension_numbers = #tpu.dot_dimension_numbers<[1], [0], [0], [1], [0, 0, 1, 1], [], []>} : vector<8x128xf32>, vector<128x384xf32>, vector<8x384xf32> -> vector<8x384xf32>
      %71 = vector.broadcast %66 : vector<1x384xf32> to vector<8x384xf32>
      %72 = arith.addf %70, %71 : vector<8x384xf32>
      %73 = vector.extract_strided_slice %69 {offsets = [0, 0], sizes = [8, 128], strides = [1, 1]} : vector<8x384xf32> to vector<8x128xf32>
      %74 = vector.extract_strided_slice %72 {offsets = [0, 0], sizes = [8, 128], strides = [1, 1]} : vector<8x384xf32> to vector<8x128xf32>
      %75 = arith.addf %73, %74 : vector<8x128xf32>
      %76 = arith.negf %75 : vector<8x128xf32>
      %77 = math.exp %76 : vector<8x128xf32>
      %cst_49 = arith.constant 1.000000e+00 : f32
      %78 = vector.broadcast %cst_49 : f32 to vector<8x128xf32>
      %79 = arith.addf %78, %77 : vector<8x128xf32>
      %80 = arith.divf %78, %79 : vector<8x128xf32>
      %81 = vector.extract_strided_slice %69 {offsets = [0, 128], sizes = [8, 128], strides = [1, 1]} : vector<8x384xf32> to vector<8x128xf32>
      %82 = vector.extract_strided_slice %72 {offsets = [0, 128], sizes = [8, 128], strides = [1, 1]} : vector<8x384xf32> to vector<8x128xf32>
      %83 = arith.addf %81, %82 : vector<8x128xf32>
      %84 = arith.negf %83 : vector<8x128xf32>
      %85 = math.exp %84 : vector<8x128xf32>
      %cst_50 = arith.constant 1.000000e+00 : f32
      %86 = vector.broadcast %cst_50 : f32 to vector<8x128xf32>
      %87 = arith.addf %86, %85 : vector<8x128xf32>
      %88 = arith.divf %86, %87 : vector<8x128xf32>
      %89 = vector.extract_strided_slice %69 {offsets = [0, 256], sizes = [8, 128], strides = [1, 1]} : vector<8x384xf32> to vector<8x128xf32>
      %90 = vector.extract_strided_slice %72 {offsets = [0, 256], sizes = [8, 128], strides = [1, 1]} : vector<8x384xf32> to vector<8x128xf32>
      %91 = arith.mulf %80, %90 : vector<8x128xf32>
      %92 = arith.addf %89, %91 : vector<8x128xf32>
      %93 = math.tanh %92 : vector<8x128xf32>
      %cst_51 = arith.constant 1.000000e+00 : f32
      %94 = vector.broadcast %cst_51 : f32 to vector<8x128xf32>
      %95 = arith.subf %94, %88 : vector<8x128xf32>
      %96 = arith.mulf %95, %93 : vector<8x128xf32>
      %97 = arith.mulf %88, %62 : vector<8x128xf32>
      %98 = arith.addf %96, %97 : vector<8x128xf32>
      %c0_52 = arith.constant 0 : index
      %c0_53 = arith.constant 0 : index
      %c0_54 = arith.constant 0 : index
      %99 = vector.load %arg15[%c0_52, %c0_53, %c0_54] : memref<2x8x128xf32, #tpu.memory_space<vmem>>, vector<1x8x128xf32>
      %100 = vector.shape_cast %99 : vector<1x8x128xf32> to vector<8x128xf32>
      %101 = vector.shape_cast %98 : vector<8x128xf32> to vector<1x8x128xf32>
      tpu.vector_store %arg15[%c0_52, %c0_53, %c0_54], %101 {strides = array<i32>} : memref<2x8x128xf32, #tpu.memory_space<vmem>>, vector<1x8x128xf32>,
      %c1_55 = arith.constant 1 : index
      %c0_56 = arith.constant 0 : index
      %c0_57 = arith.constant 0 : index
      %102 = vector.load %arg2[%c1_55, %c0_56, %c0_57] : memref<2x8x128xf32, #tpu.memory_space<vmem>>, vector<1x8x128xf32>
      %103 = vector.shape_cast %102 : vector<1x8x128xf32> to vector<8x128xf32>
      %c0_58 = arith.constant 0 : index
      %c0_59 = arith.constant 0 : index
      %c0_60 = arith.constant 0 : index
      %104 = vector.load %arg11[%c0_58, %c0_59, %c0_60] : memref<1x128x384xf32, #tpu.memory_space<vmem>>, vector<1x128x384xf32>
      %105 = vector.shape_cast %104 : vector<1x128x384xf32> to vector<128x384xf32>
      %c0_61 = arith.constant 0 : index
      %c0_62 = arith.constant 0 : index
      %c0_63 = arith.constant 0 : index
      %106 = vector.load %arg12[%c0_61, %c0_62, %c0_63] : memref<1x128x384xf32, #tpu.memory_space<vmem>>, vector<1x128x384xf32>
      %107 = vector.shape_cast %106 : vector<1x128x384xf32> to vector<128x384xf32>
      %c0_64 = arith.constant 0 : index
      %c0_65 = arith.constant 0 : index
      %c0_66 = arith.constant 0 : index
      %108 = vector.load %arg13[%c0_64, %c0_65, %c0_66] : memref<1x1x384xf32, #tpu.memory_space<vmem>>, vector<1x1x384xf32>
      %109 = vector.shape_cast %108 : vector<1x1x384xf32> to vector<1x384xf32>
      %c0_67 = arith.constant 0 : index
      %c0_68 = arith.constant 0 : index
      %c0_69 = arith.constant 0 : index
      %110 = vector.load %arg14[%c0_67, %c0_68, %c0_69] : memref<1x1x384xf32, #tpu.memory_space<vmem>>, vector<1x1x384xf32>
      %111 = vector.shape_cast %110 : vector<1x1x384xf32> to vector<1x384xf32>
      %cst_70 = arith.constant dense<0.000000e+00> : vector<8x384xf32>
      %112 = tpu.matmul %98, %105, %cst_70 {dimension_numbers = #tpu.dot_dimension_numbers<[1], [0], [0], [1], [0, 0, 1, 1], [], []>} : vector<8x128xf32>, vector<128x384xf32>, vector<8x384xf32> -> vector<8x384xf32>
      %113 = vector.broadcast %109 : vector<1x384xf32> to vector<8x384xf32>
      %114 = arith.addf %112, %113 : vector<8x384xf32>
      %cst_71 = arith.constant dense<0.000000e+00> : vector<8x384xf32>
      %115 = tpu.matmul %103, %107, %cst_71 {dimension_numbers = #tpu.dot_dimension_numbers<[1], [0], [0], [1], [0, 0, 1, 1], [], []>} : vector<8x128xf32>, vector<128x384xf32>, vector<8x384xf32> -> vector<8x384xf32>
      %116 = vector.broadcast %111 : vector<1x384xf32> to vector<8x384xf32>
      %117 = arith.addf %115, %116 : vector<8x384xf32>
      %118 = vector.extract_strided_slice %114 {offsets = [0, 0], sizes = [8, 128], strides = [1, 1]} : vector<8x384xf32> to vector<8x128xf32>
      %119 = vector.extract_strided_slice %117 {offsets = [0, 0], sizes = [8, 128], strides = [1, 1]} : vector<8x384xf32> to vector<8x128xf32>
      %120 = arith.addf %118, %119 : vector<8x128xf32>
      %121 = arith.negf %120 : vector<8x128xf32>
      %122 = math.exp %121 : vector<8x128xf32>
      %cst_72 = arith.constant 1.000000e+00 : f32
      %123 = vector.broadcast %cst_72 : f32 to vector<8x128xf32>
      %124 = arith.addf %123, %122 : vector<8x128xf32>
      %125 = arith.divf %123, %124 : vector<8x128xf32>
      %126 = vector.extract_strided_slice %114 {offsets = [0, 128], sizes = [8, 128], strides = [1, 1]} : vector<8x384xf32> to vector<8x128xf32>
      %127 = vector.extract_strided_slice %117 {offsets = [0, 128], sizes = [8, 128], strides = [1, 1]} : vector<8x384xf32> to vector<8x128xf32>
      %128 = arith.addf %126, %127 : vector<8x128xf32>
      %129 = arith.negf %128 : vector<8x128xf32>
      %130 = math.exp %129 : vector<8x128xf32>
      %cst_73 = arith.constant 1.000000e+00 : f32
      %131 = vector.broadcast %cst_73 : f32 to vector<8x128xf32>
      %132 = arith.addf %131, %130 : vector<8x128xf32>
      %133 = arith.divf %131, %132 : vector<8x128xf32>
      %134 = vector.extract_strided_slice %114 {offsets = [0, 256], sizes = [8, 128], strides = [1, 1]} : vector<8x384xf32> to vector<8x128xf32>
      %135 = vector.extract_strided_slice %117 {offsets = [0, 256], sizes = [8, 128], strides = [1, 1]} : vector<8x384xf32> to vector<8x128xf32>
      %136 = arith.mulf %125, %135 : vector<8x128xf32>
      %137 = arith.addf %134, %136 : vector<8x128xf32>
      %138 = math.tanh %137 : vector<8x128xf32>
      %cst_74 = arith.constant 1.000000e+00 : f32
      %139 = vector.broadcast %cst_74 : f32 to vector<8x128xf32>
      %140 = arith.subf %139, %133 : vector<8x128xf32>
      %141 = arith.mulf %140, %138 : vector<8x128xf32>
      %142 = arith.mulf %133, %103 : vector<8x128xf32>
      %143 = arith.addf %141, %142 : vector<8x128xf32>
      %c1_75 = arith.constant 1 : index
      %c0_76 = arith.constant 0 : index
      %c0_77 = arith.constant 0 : index
      %144 = vector.load %arg15[%c1_75, %c0_76, %c0_77] : memref<2x8x128xf32, #tpu.memory_space<vmem>>, vector<1x8x128xf32>
      %145 = vector.shape_cast %144 : vector<1x8x128xf32> to vector<8x128xf32>
      %146 = vector.shape_cast %143 : vector<8x128xf32> to vector<1x8x128xf32>
      tpu.vector_store %arg15[%c1_75, %c0_76, %c0_77], %146 {strides = array<i32>} : memref<2x8x128xf32, #tpu.memory_space<vmem>>, vector<1x8x128xf32>,
      %c0_78 = arith.constant 0 : index
      %c0_79 = arith.constant 0 : index
      %147 = vector.load %arg16[%c0_78, %c0_79] : memref<8x128xf32, #tpu.memory_space<vmem>>, vector<8x128xf32>
      tpu.vector_store %arg16[%c0_78, %c0_79], %143 {strides = array<i32>} : memref<8x128xf32, #tpu.memory_space<vmem>>, vector<8x128xf32>,
    } else {
    }
    return
  }
  func.func @transform_0(%arg0: i32) -> (i32, i32, i32) {
    %c0_i32 = arith.constant 0 : i32
    %c0_i32_0 = arith.constant 0 : i32
    %c0_i32_1 = arith.constant 0 : i32
    return %arg0, %c0_i32, %c0_i32_0 : i32, i32, i32
  }
  func.func @transform_1(%arg0: i32) -> (i32, i32, i32) {
    %c0_i32 = arith.constant 0 : i32
    %c0_i32_0 = arith.constant 0 : i32
    %c0_i32_1 = arith.constant 0 : i32
    %c0_i32_2 = arith.constant 0 : i32
    return %c0_i32, %c0_i32_0, %c0_i32_1 : i32, i32, i32
  }
  func.func @transform_2(%arg0: i32) -> (i32, i32) {
    %c0_i32 = arith.constant 0 : i32
    %c0_i32_0 = arith.constant 0 : i32
    %c0_i32_1 = arith.constant 0 : i32
    return %c0_i32, %c0_i32_0 : i32, i32
  }
  func.func @transform_3(%arg0: i32) -> (i32, i32) {
    %c0_i32 = arith.constant 0 : i32
    %c0_i32_0 = arith.constant 0 : i32
    %c0_i32_1 = arith.constant 0 : i32
    return %c0_i32, %c0_i32_0 : i32, i32
  }
  func.func @transform_4(%arg0: i32) -> (i32, i32) {
    %c0_i32 = arith.constant 0 : i32
    %c0_i32_0 = arith.constant 0 : i32
    %c0_i32_1 = arith.constant 0 : i32
    return %c0_i32, %c0_i32_0 : i32, i32
  }
  func.func @transform_5(%arg0: i32) -> (i32, i32) {
    %c0_i32 = arith.constant 0 : i32
    %c0_i32_0 = arith.constant 0 : i32
    %c0_i32_1 = arith.constant 0 : i32
    return %c0_i32, %c0_i32_0 : i32, i32
  }
  func.func @transform_6(%arg0: i32) -> (i32, i32) {
    %c0_i32 = arith.constant 0 : i32
    %c0_i32_0 = arith.constant 0 : i32
    %c0_i32_1 = arith.constant 0 : i32
    return %c0_i32, %c0_i32_0 : i32, i32
  }
  func.func @transform_7(%arg0: i32) -> (i32, i32) {
    %c0_i32 = arith.constant 0 : i32
    %c0_i32_0 = arith.constant 0 : i32
    %c0_i32_1 = arith.constant 0 : i32
    return %c0_i32, %c0_i32_0 : i32, i32
  }
  func.func @transform_8(%arg0: i32) -> (i32, i32) {
    %c0_i32 = arith.constant 0 : i32
    %c0_i32_0 = arith.constant 0 : i32
    %c0_i32_1 = arith.constant 0 : i32
    return %c0_i32, %c0_i32_0 : i32, i32
  }
  func.func @transform_9(%arg0: i32) -> (i32, i32) {
    %c0_i32 = arith.constant 0 : i32
    %c0_i32_0 = arith.constant 0 : i32
    %c0_i32_1 = arith.constant 0 : i32
    return %c0_i32, %c0_i32_0 : i32, i32
  }
  func.func @transform_10(%arg0: i32) -> (i32, i32, i32) {
    %c0_i32 = arith.constant 0 : i32
    %c0_i32_0 = arith.constant 0 : i32
    %c0_i32_1 = arith.constant 0 : i32
    %c0_i32_2 = arith.constant 0 : i32
    return %c0_i32, %c0_i32_0, %c0_i32_1 : i32, i32, i32
  }
  func.func @transform_11(%arg0: i32) -> (i32, i32, i32) {
    %c0_i32 = arith.constant 0 : i32
    %c0_i32_0 = arith.constant 0 : i32
    %c0_i32_1 = arith.constant 0 : i32
    %c0_i32_2 = arith.constant 0 : i32
    return %c0_i32, %c0_i32_0, %c0_i32_1 : i32, i32, i32
  }
  func.func @transform_12(%arg0: i32) -> (i32, i32, i32) {
    %c0_i32 = arith.constant 0 : i32
    %c0_i32_0 = arith.constant 0 : i32
    %c0_i32_1 = arith.constant 0 : i32
    %c0_i32_2 = arith.constant 0 : i32
    return %c0_i32, %c0_i32_0, %c0_i32_1 : i32, i32, i32
  }
  func.func @transform_13(%arg0: i32) -> (i32, i32, i32) {
    %c0_i32 = arith.constant 0 : i32
    %c0_i32_0 = arith.constant 0 : i32
    %c0_i32_1 = arith.constant 0 : i32
    %c0_i32_2 = arith.constant 0 : i32
    return %c0_i32, %c0_i32_0, %c0_i32_1 : i32, i32, i32
  }
  func.func @transform_14(%arg0: i32) -> (i32, i32, i32) {
    %c0_i32 = arith.constant 0 : i32
    %c0_i32_0 = arith.constant 0 : i32
    %c0_i32_1 = arith.constant 0 : i32
    %c0_i32_2 = arith.constant 0 : i32
    return %c0_i32, %c0_i32_0, %c0_i32_1 : i32, i32, i32
  }
  func.func @transform_15(%arg0: i32) -> (i32, i32) {
    %c0_i32 = arith.constant 0 : i32
    %c0_i32_0 = arith.constant 0 : i32
    %c0_i32_1 = arith.constant 0 : i32
    return %c0_i32, %c0_i32_0 : i32, i32
  }
}

</mosaic_0001>

<bundles_post_ra>
// kernel: tpu_custom_call.1
= control target key start
LH: loop header
LB: loop body
LE: loop exit
PB: predicated region body
PF: predicated region fallthrough
CT: control target
= control target key end

     0   :  { %21 = vsyncpa [#allocation6], 0  ;;  %s3070_s0 = inlined_call_operand.vmem [shape: f32[9,8,128], index: 0, kind: input, shape index: {}]   ;;  %s3071_s1 = inlined_call_operand.vmem [shape: f32[2,8,128], index: 1, kind: input, shape index: {}]   ;;  %s3072_s2 = inlined_call_operand.vmem [shape: f32[8,32], index: 2, kind: input, shape index: {}]   ;;  %s3073_s3 = inlined_call_operand.vmem [shape: f32[128,16], index: 3, kind: input, shape index: {}]   ;;  %s3074_s4 = inlined_call_operand.vmem [shape: f32[128,16], index: 4, kind: input, shape index: {}]   ;;  %s3075_s5 = inlined_call_operand.vmem [shape: f32[16,1], index: 5, kind: input, shape index: {}]   ;;  %s3076_s6 = inlined_call_operand.hbm [shape: f32[160,384], index: 6, kind: input, shape index: {}]   ;;  %s3077_s7 = inlined_call_operand.hbm [shape: f32[128,384], index: 7, kind: input, shape index: {}]   ;;  %s3078_s8 = inlined_call_operand.vmem [shape: f32[1,384], index: 8, kind: input, shape index: {}]   ;;  %s3079_s9 = inlined_call_operand.vmem [shape: f32[1,384], index: 9, kind: input, shape index: {}]   ;;  %s3080_s10 = inlined_call_operand.hbm [shape: f32[1,128,384], index: 10, kind: input, shape index: {}]   ;;  %s3081_s11 = inlined_call_operand.hbm [shape: f32[1,128,384], index: 11, kind: input, shape index: {}]   ;;  %s3082_s12 = inlined_call_operand.vmem [shape: f32[1,1,384], index: 12, kind: input, shape index: {}]   ;;  %s3083_s13 = inlined_call_operand.vmem [shape: f32[1,1,384], index: 13, kind: input, shape index: {}]   ;;  %s3084_s14 = inlined_call_operand.hbm [shape: f32[2,8,128], index: 14, kind: output, shape index: {0}]   ;;  %s3085_s15 = inlined_call_operand.hbm [shape: f32[8,128], index: 15, kind: output, shape index: {1}]  }
   0x1   :  { %22 = vsyncpa [#allocation9], 0 }
   0x2   :  { %23 = vsyncpa [#allocation12], 0 }
   0x3   :  { %24 = vsyncpa [#allocation7], 0 }
   0x4   :  { %25 = vsyncpa [#allocation15], 0  ;;  %s2632_s18 = smov 0  }
   0x5 LB: > { %s2638_s19 = sadd.s32 4294967295, %s2531_s18   ;;  %p1921_p0 = scmp.ge.s32.totalorder %s2531_s18, 1  ;;  %s2531_s18 = sphi %s2632_s18, %s31_s18  }
   0x6   : > { %p377_p1 = scmp.lt.s32.totalorder %s2531_s18, 4  ;;  %p1922_p2 = scmp.ne.s32.totalorder %s2638_s19, 0 }
   0x7   : > { %p2275_p3 = scmp.eq.s32.totalorder %s2638_s19, 0  ;;  %s2533_s21 = smov [#allocation8]  }
   0x8   : > { %p2644_p4 = pnand %p1921_p0, %p377_p1  ;;  %s417_s22 = sshll.u32 %s2533_s21, 4  ;;  %s418_s22 = int_to_ptr.vmem [resolvable:$true] %s417_s22 }
   0x9   : > { %s2534_s23 = smov [#allocation5]   ;;  %s2535_s26 = smov [#allocation10]  }
   0xa   : > { %p2262_p5 = pneg %p2644_p4  ;;  %s404_s24 = sshll.u32 %s2534_s23, 4  ;;  %s2650_s24 = int_to_ptr.vmem [resolvable:$true] %s404_s24 }
   0xb   : > { %s436_s27 = sshll.u32 %s2535_s26, 4  ;;  %s2536_s28 = smov [#allocation11]   ;;  %s2658_s27 = int_to_ptr.vmem [resolvable:$true] %s436_s27 }
   0xc   : > { %p2654_p6 = pnand %p2275_p3, %p2262_p5  ;;  %s2660_s29 = sshll.u32 %s2536_s28, 4  ;;  %s450_s29 = int_to_ptr.vmem [resolvable:$true] %s2660_s29 }
   0xd   : > { %s2364_s30 = scalar_lea.vmem %s418_s22, 6144  ;;  %p2372_p11 = scmp.lt.s32.totalorder %s418_s22, %s418_s22 }
   0xe   : > { %p2355_p7 = pneg %p2654_p6  ;;  %p2365_p8 = scmp.ne.s32.totalorder %s418_s22, %s2364_s30 }
   0xf   : > { %p2373_p12 = scmp.lt.s32.totalorder %s2364_s30, %s2364_s30 }
  0x10   : > { %p2367_p9 = pnand %p2365_p8, %p2355_p7 }
  0x11   : > { %p2374_p13 = por %p2373_p12, %p2372_p11 }
  0x12   : > { %p2368_p10 = pneg %p2367_p9 }
  0x14   : > { %p2375_p0 = pnand %p2374_p13, %p2368_p10 }
  0x16   : > { %2378 = shalt.err (!%p2375_p0)
}
  0x17   : > { %s2537_s16 = smov 384   ;;  %s2538_s17 = smov 24  }
  0x18   : > { %2268 = dma.hbm_to_vmem [thread:$0]  (!%p2654_p6), %s3077_s7, 6144, %s418_s22, [#allocation9], %s2537_s16, %s2537_s16, %s2538_s17  }
  0x19   : > { %s2390_s26 = scalar_lea.vmem %s2650_s24, 7680  ;;  %p2398_p9 = scmp.lt.s32.totalorder %s2650_s24, %s2650_s24 }
  0x1a   : > { %p2391_p1 = scmp.ne.s32.totalorder %s2650_s24, %s2390_s26  ;;  %p2399_p10 = scmp.lt.s32.totalorder %s2390_s26, %s2390_s26 }
  0x1c   : > { %p2393_p5 = pnand %p2391_p1, %p2355_p7  ;;  %p2400_p11 = por %p2399_p10, %p2398_p9 }
  0x1e   : > { %p2394_p8 = pneg %p2393_p5 }
  0x20   : > { %p2401_p12 = pnand %p2400_p11, %p2394_p8 }
  0x22   : > { %2404 = shalt.err (!%p2401_p12)
}
  0x23   : > { %2265 = dma.hbm_to_vmem [thread:$0]  (!%p2654_p6), %s3076_s6, 7680, %s2650_s24, [#allocation6], %s2537_s16, %s2537_s16, %s2538_s17  }
  0x24   : > { %s2416_s30 = scalar_lea.vmem %s2658_s27, 6144  ;;  %p2424_p5 = scmp.lt.s32.totalorder %s2658_s27, %s2658_s27 }
  0x25   : > { %p2417_p13 = scmp.ne.s32.totalorder %s2658_s27, %s2416_s30  ;;  %p2425_p8 = scmp.lt.s32.totalorder %s2416_s30, %s2416_s30 }
  0x27   : > { %p2419_p0 = pnand %p2417_p13, %p2355_p7  ;;  %p2426_p9 = por %p2425_p8, %p2424_p5 }
  0x29   : > { %p2420_p1 = pneg %p2419_p0 }
  0x2b   : > { %p2427_p10 = pnand %p2426_p9, %p2420_p1 }
  0x2d   : > { %2430 = shalt.err (!%p2427_p10)
}
  0x2e   : > { %2271 = dma.hbm_to_vmem [thread:$0]  (!%p2654_p6), %s3080_s10, 6144, %s2658_s27, [#allocation9], %s2537_s16, %s2537_s16, %s2538_s17  }
  0x2f   : > { %s2442_s23 = scalar_lea.vmem %s450_s29, 6144  ;;  %p2450_p0 = scmp.lt.s32.totalorder %s450_s29, %s450_s29 }
  0x30   : > { %p2443_p11 = scmp.ne.s32.totalorder %s450_s29, %s2442_s23  ;;  %p2451_p1 = scmp.lt.s32.totalorder %s2442_s23, %s2442_s23 }
  0x32   : > { %p2445_p12 = pnand %p2443_p11, %p2355_p7  ;;  %p2452_p5 = por %p2451_p1, %p2450_p0 }
  0x34   : > { %p2446_p13 = pneg %p2445_p12 }
  0x36   : > { %p2453_p8 = pnand %p2452_p5, %p2446_p13 }
  0x38   : > { %2456 = shalt.err (!%p2453_p8)
}
  0x39   : > { %2274 = dma.hbm_to_vmem [thread:$0]  (!%p2654_p6), %s3081_s11, 6144, %s450_s29, [#allocation12], %s2537_s16, %s2537_s16, %s2538_s17  }
  0x3a   : > { %480 = sbr.rel (%p2644_p4) target bundleno = 1541 (0x605), region = 76 }
  0x3f   : > { %2510 = dma.done.wait (%p2275_p3), [#allocation6], 7680  }
  0x40   : > { %2512 = vsyncadd (%p2275_p3), [#allocation6], 4294959616 }
  0x41   : > { %2514 = dma.done.wait (%p2275_p3), [#allocation9], 12288  }
  0x42   : > { %2516 = vsyncadd (%p2275_p3), [#allocation9], 4294955008 }
  0x43   : > { %2518 = dma.done.wait (%p2275_p3), [#allocation12], 6144  }
  0x44   : > { %2520 = vsyncadd (%p2275_p3), [#allocation12], 4294961152  ;;  %s2734_s20 = smul.u32 3, %s2638_s19 }
  0x46   : > { %p536_p4 = scmp.lt.s32.totalorder %s2734_s20, 8 }
  0x47   : > { %544 = sbr.rel (%p1922_p2) target bundleno = 79 (0x4f), region = 96 }
  0x48   : > { %s537_s25 = scalar_select %p536_p4, %s2734_s20, 8 }
  0x4a   : > { %s1932_s27 = sshll.u32 %s537_s25, 3 }
  0x4b   : > { %s2741_s17 = scalar_lea.vmem %s3070_s0, %s1932_s27 }
  0x4c   : > { %vm545_vm0 = vcmask 7168   ;;  %v2539_v0 = vmov -1e+30   ;;  %v2540_v1 = vmov 0.0  }
  0x4d   : > { %546 = vst.msk [vmem:[#allocation2] sm:$0xff] %vm545_vm0, %v2539_v0  ;;  %547 = vst.msk [vmem:[#allocation3] sm:$0xff] %vm545_vm0, %v2540_v1 }
  0x4e   : > { %548 = vst [vmem:[#allocation4] sm:$0xff] %v2540_v1 }
  0x4f PF: > { %v569_v2 = vld [vmem:[%s3073_s3 + $0x78] sm:$0xff]  ;;  %v2541_v4 = vmov 0.0   ;;  %v568_v5 = vld [vmem:[%s3073_s3 + $0x70] sm:$0xff]  ;;  %v567_v7 = vld [vmem:[%s3073_s3 + $0x68] sm:$0xff]  ;;  %vm2542_vm1 = vmmov 0   ;;  %vm744_vm2 = vcmask 130048   ;;  %v835_v56 = vstv %s2734_s20 }
  0x50   : > { %v665_v3 = vld [vmem:[%s3074_s4 + $0x78] sm:$0xff]  ;;  %2044 = vmatprep.subr.mxu0 %v2541_v4  ;;  %2085 = vmatprep.subr.mxu1 %v2541_v4  ;;  %v664_v6 = vld [vmem:[%s3074_s4 + $0x70] sm:$0xff]  ;;  %v663_v8 = vld [vmem:[%s3074_s4 + $0x68] sm:$0xff]  ;;  %v2543_v55 = vmov 0   ;;  %v836_v57 = vadd.s32 1, %v835_v56  ;;  %vm838_vm3 = vcmp.lt.s32.totalorder %v835_v56, 8 }
  0x51   : > { %2045 = vmatpush3.msra.mxu0 %v569_v2  ;;  %2086 = vmatpush3.msra.mxu1 %v665_v3  ;;  %v566_v9 = vld [vmem:[%s3073_s3 + $0x60] sm:$0xff]  ;;  %v565_v11 = vld [vmem:[%s3073_s3 + $0x58] sm:$0xff]  ;;  %v564_v13 = vld [vmem:[%s3073_s3 + $0x50] sm:$0xff]  ;;  %v837_v60 = vadd.s32 2, %v835_v56  ;;  %vm845_vm5 = vcmask 7168   ;;  %p1938_p2 = scmp.ne.s32.totalorder %s2638_s19, 2 }
  0x52   : > { %2046 = vmatprep.subr.mxu0 %v2541_v4  ;;  %2087 = vmatprep.subr.mxu1 %v2541_v4  ;;  %v662_v10 = vld [vmem:[%s3074_s4 + $0x60] sm:$0xff]  ;;  %v661_v12 = vld [vmem:[%s3074_s4 + $0x58] sm:$0xff]  ;;  %v660_v14 = vld [vmem:[%s3074_s4 + $0x50] sm:$0xff]  ;;  %vm839_vm4 = vcmp.lt.s32.totalorder %v836_v57, 8  ;;  %s2546_s20 = smov (!%p1938_p2), 32  }
  0x53   : > { %2047 = vmatpush3.msra.mxu0 %v568_v5  ;;  %2088 = vmatpush3.msra.mxu1 %v664_v6  ;;  %v563_v15 = vld [vmem:[%s3073_s3 + $0x48] sm:$0xff]  ;;  %v562_v17 = vld [vmem:[%s3073_s3 + $0x40] sm:$0xff]  ;;  %v561_v19 = vld [vmem:[%s3073_s3 + $0x38] sm:$0xff]  ;;  %vm840_vm6 = vcmp.lt.s32.totalorder %v837_v60, 8 }
  0x54   : > { %2048 = vmatprep.subr.mxu0 %v2541_v4  ;;  %2089 = vmatprep.subr.mxu1 %v2541_v4  ;;  %v659_v16 = vld [vmem:[%s3074_s4 + $0x48] sm:$0xff]  ;;  %v658_v18 = vld [vmem:[%s3074_s4 + $0x40] sm:$0xff]  ;;  %v657_v20 = vld [vmem:[%s3074_s4 + $0x38] sm:$0xff] }
  0x55   : > { %2049 = vmatpush3.msra.mxu0 %v567_v7  ;;  %2090 = vmatpush3.msra.mxu1 %v663_v8  ;;  %v560_v21 = vld [vmem:[%s3073_s3 + $0x30] sm:$0xff]  ;;  %v559_v23 = vld [vmem:[%s3073_s3 + $0x28] sm:$0xff]  ;;  %v558_v25 = vld [vmem:[%s3073_s3 + $0x20] sm:$0xff] }
  0x56   : > { %2050 = vmatprep.subr.mxu0 %v2541_v4  ;;  %2091 = vmatprep.subr.mxu1 %v2541_v4  ;;  %v656_v22 = vld [vmem:[%s3074_s4 + $0x30] sm:$0xff]  ;;  %v655_v24 = vld [vmem:[%s3074_s4 + $0x28] sm:$0xff]  ;;  %v654_v26 = vld [vmem:[%s3074_s4 + $0x20] sm:$0xff] }
  0x57   : > { %2051 = vmatpush3.msra.mxu0 %v566_v9  ;;  %2092 = vmatpush3.msra.mxu1 %v662_v10  ;;  %v557_v27 = vld [vmem:[%s3073_s3 + $0x18] sm:$0xff]  ;;  %v556_v29 = vld [vmem:[%s3073_s3 + $0x10] sm:$0xff]  ;;  %v555_v31 = vld [vmem:[%s3073_s3 + $0x8] sm:$0xff] }
  0x58   : > { %2052 = vmatprep.subr.mxu0 %v2541_v4  ;;  %2093 = vmatprep.subr.mxu1 %v2541_v4  ;;  %v653_v28 = vld [vmem:[%s3074_s4 + $0x18] sm:$0xff]  ;;  %v652_v30 = vld [vmem:[%s3074_s4 + $0x10] sm:$0xff]  ;;  %v651_v32 = vld [vmem:[%s3074_s4 + $0x8] sm:$0xff] }
  0x59   : > { %2053 = vmatpush3.msra.mxu0 %v565_v11  ;;  %2094 = vmatpush3.msra.mxu1 %v661_v12  ;;  %v554_v33 = vld [vmem:[%s3073_s3] sm:$0xff]  ;;  %v1934_v36 = vld [vmem:[%s3071_s1 + $0x8] sm:$0xff]  ;;  %v2896_v38 = vld [vmem:[%s2741_s17 + $0x10] sm:$0xff] }
  0x5a   : > { %2054 = vmatprep.subr.mxu0 %v2541_v4  ;;  %2095 = vmatprep.subr.mxu1 %v2541_v4  ;;  %v650_v34 = vld [vmem:[%s3074_s4] sm:$0xff]  ;;  %v2887_v37 = vld [vmem:[%s2741_s17 + $0x8] sm:$0xff] }
  0x5b   : > { %2055 = vmatpush3.msra.mxu0 %v564_v13  ;;  %2096 = vmatpush3.msra.mxu1 %v660_v14  ;;  %v2874_v35 = vld [vmem:[%s2741_s17] sm:$0xff]  ;;  %v743_v39 = vld [vmem:[%s3075_s5 + $0x8] sm:$0xff] }
  0x5c   : > { %2056 = vmatprep.subr.mxu0 %v2541_v4  ;;  %2097 = vmatprep.subr.mxu1 %v2541_v4  ;;  %v742_v40 = vld [vmem:[%s3075_s5] sm:$0xff] }
  0x5d   : > { %2057 = vmatpush3.msra.mxu0 %v563_v15  ;;  %2098 = vmatpush3.msra.mxu1 %v659_v16  ;;  %v844_v6 = vld [vmem:[#allocation2] sm:$0xff] }
  0x5e   : > { %2058 = vmatprep.subr.mxu0 %v2541_v4  ;;  %2099 = vmatprep.subr.mxu1 %v2541_v4 }
  0x5f   : > { %2059 = vmatpush3.msra.mxu0 %v562_v17  ;;  %2100 = vmatpush3.msra.mxu1 %v658_v18 }
  0x60   : > { %2060 = vmatprep.subr.mxu0 %v2541_v4  ;;  %2101 = vmatprep.subr.mxu1 %v2541_v4 }
  0x61   : > { %2061 = vmatpush3.msra.mxu0 %v561_v19  ;;  %2102 = vmatpush3.msra.mxu1 %v657_v20 }
  0x62   : > { %2062 = vmatprep.subr.mxu0 %v2541_v4  ;;  %2103 = vmatprep.subr.mxu1 %v2541_v4 }
  0x63   : > { %2063 = vmatpush3.msra.mxu0 %v560_v21  ;;  %2104 = vmatpush3.msra.mxu1 %v656_v22 }
  0x64   : > { %2064 = vmatprep.subr.mxu0 %v2541_v4  ;;  %2105 = vmatprep.subr.mxu1 %v2541_v4 }
  0x65   : > { %2065 = vmatpush3.msra.mxu0 %v559_v23  ;;  %2106 = vmatpush3.msra.mxu1 %v655_v24  ;;  %v865_v24 = vld [vmem:[#allocation3] sm:$0xff] }
  0x66   : > { %2066 = vmatprep.subr.mxu0 %v2541_v4  ;;  %2107 = vmatprep.subr.mxu1 %v2541_v4 }
  0x67   : > { %2067 = vmatpush3.msra.mxu0 %v558_v25  ;;  %2108 = vmatpush3.msra.mxu1 %v654_v26 }
  0x68   : > { %2068 = vmatprep.subr.mxu0 %v2541_v4  ;;  %2109 = vmatprep.subr.mxu1 %v2541_v4 }
  0x69   : > { %2069 = vmatpush3.msra.mxu0 %v557_v27  ;;  %2110 = vmatpush3.msra.mxu1 %v653_v28 }
  0x6a   : > { %2070 = vmatprep.subr.mxu0 %v2541_v4  ;;  %2111 = vmatprep.subr.mxu1 %v2541_v4 }
  0x6b   : > { %2071 = vmatpush3.msra.mxu0 %v556_v29  ;;  %2112 = vmatpush3.msra.mxu1 %v652_v30 }
  0x6c   : > { %2072 = vmatprep.subr.mxu0 %v2541_v4  ;;  %2113 = vmatprep.subr.mxu1 %v2541_v4 }
  0x6d   : > { %2073 = vmatpush3.msra.mxu0 %v555_v31  ;;  %2114 = vmatpush3.msra.mxu1 %v651_v32 }
  0x6e   : > { %2074 = vmatprep.subr.mxu0 %v2541_v4  ;;  %2115 = vmatprep.subr.mxu1 %v2541_v4 }
  0x6f   : > { %2075 = vmatpush3.msra.mxu0 %v554_v33  ;;  %2076 = vmatprep.mubr.msk.f32.mxu0 %vm2542_vm1, %v2541_v4 }
  0x70   : > { %2116 = vmatpush3.msra.mxu1 %v650_v34  ;;  %2117 = vmatprep.mubr.msk.f32.mxu1 %vm2542_vm1, %v2541_v4 }
  0x71   : > { %2077 = vmatmul.mubr.f32.vlgmr.msra.gmra.mxu0 %v2874_v35  ;;  %2118 = vmatmul.mubr.f32.vlgmr.msra.gmra.mxu1 %v1934_v36 }
  0x72   : > { %2079 = vmatprep.mubr.msk.f32.mxu0 %vm2542_vm1, %v2541_v4  ;;  %2120 = vmatprep.subr.mxu1 %v2541_v4 }
  0x73   : > { %2124 = vmatprep.mubr.msk.f32.mxu1 %vm2542_vm1, %v2541_v4  ;;  %2121 = vmatpush3.msra.mxu1 %v743_v39  ;;  %v874_v39 = vld [vmem:[#allocation4] sm:$0xff] }
  0x74   : > { %2122 = vmatprep.subr.mxu1 %v2541_v4  ;;  %2315 = vset.pattern.permute.xlu1 %v2543_v55 }
  0x75   : > { %2080 = vmatmul.mubr.f32.gmra.mxu0 %v2887_v37  ;;  %2123 = vmatpush3.msra.mxu1 %v742_v40 }
  0x76   : > { %2082 = vmatprep.mubr.msk.f32.mxu0 %vm2542_vm1, %v2541_v4  ;;  %2314 = vset.pattern.permute.xlu0 %v2543_v55 }
  0x79   : > { %2083 = vmatmul.mubr.f32.gmra.mxu0 %v2896_v38 }
 0x131   : > { %v636_v41 = vpop.f32.mrf.mxu0  ;;  %v732_v42 = vpop.f32.mrf.mxu1 }
 0x132   : > { %v736_v43 = vadd.f32 %v732_v42, %v636_v41 }
 0x133   : > { %v2078_v44 = vpop.f32.mrf.mxu0  ;;  %v2119_v45 = vpop.f32.mrf.mxu1 }
 0x134   : > { %2316 = vtanh.f32 %v736_v43 }
 0x135   : > { %v641_v46 = vpop.f32.mrf.mxu0 }
 0x136   : > { %v737_v47 = vadd.f32 %v732_v42, %v641_v46 }
 0x137   : > { %v2081_v48 = vpop.f32.mrf.mxu0 }
 0x138   : > { %2318 = vtanh.f32 %v737_v47 }
 0x139   : > { %v646_v49 = vpop.f32.mrf.mxu0 }
 0x13a   : > { %v738_v50 = vadd.f32 %v732_v42, %v646_v49 }
 0x13b   : > { %v2084_v51 = vpop.f32.mrf.mxu0 }
 0x13c   : > { %2320 = vtanh.f32 %v738_v50 }
 0x141   : > { %v2317_v52 = vpop.eup %2316 }
 0x142   : > { %2125 = vmatmul.mubr.msk.f32.vlgmr.msra.gmra.mxu1 %vm744_vm2, %v2317_v52 }
 0x143   : > { %2127 = vmatprep.mubr.msk.f32.mxu1 %vm2542_vm1, %v2541_v4 }
 0x145   : > { %v2319_v53 = vpop.eup %2318 }
 0x146   : > { %2128 = vmatmul.mubr.msk.f32.gmra.mxu1 %vm744_vm2, %v2319_v53 }
 0x147   : > { %2130 = vmatprep.mubr.msk.f32.mxu1 %vm2542_vm1, %v2541_v4 }
 0x149   : > { %v2321_v54 = vpop.eup %2320 }
 0x14a   : > { %2131 = vmatmul.mubr.msk.f32.gmra.mxu1 %vm744_vm2, %v2321_v54 }
 0x202   : > { %v820_v58 = vpop.f32.mrf.mxu1 }
 0x203   : > { %v841_v62 = vsel %vm838_vm3, %v820_v58, -1e+30 }
 0x204   : > { %v2126_v59 = vpop.f32.mrf.mxu1  ;;  %v846_v2 = vsel %vm845_vm5, %v841_v62, -inf }
 0x206   : > { %v825_v61 = vpop.f32.mrf.mxu1 }
 0x207   : > { %v842_v63 = vsel %vm839_vm4, %v825_v61, -1e+30 }
 0x208   : > { %v847_v0 = vsel %vm845_vm5, %v842_v63, -inf  ;;  %v2129_v1 = vpop.f32.mrf.mxu1 }
 0x209   : > { %v849_v4 = vmax.f32 %v846_v2, %v847_v0 }
 0x20a   : > { %v830_v3 = vpop.f32.mrf.mxu1 }
 0x20b   : > { %v843_v5 = vsel %vm840_vm6, %v830_v3, -1e+30 }
 0x20c   : > { %v848_v7 = vsel %vm845_vm5, %v843_v5, -inf  ;;  %v2132_v8 = vpop.f32.mrf.mxu1 }
 0x20d   : > { %v850_v9 = vmax.f32 %v849_v4, %v848_v7 }
 0x20f   : > { %v851_v10 = vmax.f32 %v844_v6, %v850_v9 }
 0x211   : > { %v852_v11 = vsub.f32 %v844_v6, %v851_v10  ;;  %v856_v12 = vsub.f32 %v842_v63, %v851_v10  ;;  %v857_v13 = vsub.f32 %v843_v5, %v851_v10  ;;  %864 = vst.msk [vmem:[#allocation2] sm:$0xff] %vm845_vm5, %v851_v10  ;;  %v855_v14 = vsub.f32 %v841_v62, %v851_v10 }
 0x213   : > { %v860_v15 = vmul.f32 1.442695, %v856_v12  ;;  %v862_v16 = vmul.f32 1.442695, %v857_v13  ;;  %v858_v17 = vmul.f32 1.442695, %v855_v14 }
 0x214   : > { %v853_v18 = vmul.f32 1.442695, %v852_v11 }
 0x215   : > { %2322 = vpow2.f32 %v860_v15 }
 0x216   : > { %2324 = vpow2.f32 %v862_v16 }
 0x217   : > { %2326 = vpow2.f32 %v858_v17 }
 0x218   : > { %2328 = vpow2.f32 %v853_v18 }
 0x222   : > { %v2323_v19 = vpop.eup %2322 }
 0x223   : > { %v2325_v20 = vpop.eup %2324  ;;  %v868_v21 = vsel %vm845_vm5, %v2323_v19, 0.0 }
 0x224   : > { %v2327_v22 = vpop.eup %2326  ;;  %893 = vperm.xlu1 %2315, %v2325_v20   ;;  %v870_v27 = vsel %vm845_vm5, %v2325_v20, 0.0 }
 0x225   : > { %v2329_v23 = vpop.eup %2328  ;;  %883 = vperm.xlu0 %2314, %v2327_v22   ;;  %v867_v25 = vsel %vm845_vm5, %v2327_v22, 0.0 }
 0x226   : > { %v869_v26 = vadd.f32 %v868_v21, %v867_v25  ;;  %v866_v28 = vmul.f32 %v2329_v23, %v865_v24 }
 0x228   : > { %v871_v29 = vadd.f32 %v870_v27, %v869_v26  ;;  %877 = vperm.xlu1 %2315, %v2329_v23  }
 0x229   : > { %888 = vperm.xlu0 %2314, %v2323_v19  }
 0x22a   : > { %v872_v30 = vadd.f32 %v871_v29, %v866_v28 }
 0x22c   : > { %873 = vst.msk [vmem:[#allocation3] sm:$0xff] %vm845_vm5, %v872_v30 }
 0x29f   : > { %v894_v31 = vpop.permute.xlu1 %893 }
 0x2a0   : > { %v884_v32 = vpop.permute.xlu0 %883  ;;  %v898_v41 = vmul.f32 %v894_v31, %v2896_v38 }
 0x2a1   : > { %v896_v34 = vmul.f32 %v884_v32, %v2874_v35 }
 0x2a3   : > { %v878_v40 = vpop.permute.xlu1 %877 }
 0x2a4   : > { %v889_v33 = vpop.permute.xlu0 %888  ;;  %v880_v44 = vmul.f32 %v878_v40, %v874_v39 }
 0x2a5   : > { %v897_v36 = vmul.f32 %v889_v33, %v2887_v37 }
 0x2a7   : > { %v899_v42 = vadd.f32 %v897_v36, %v896_v34 }
 0x2a9   : > { %v900_v43 = vadd.f32 %v899_v42, %v898_v41  ;;  %906 = sbr.rel (%p1938_p2) target bundleno = 1510 (0x5e6), region = 100 }
 0x2ab   : > { %v901_v45 = vadd.f32 %v900_v43, %v880_v44 }
 0x2ad   : > { %902 = vst [vmem:[#allocation4] sm:$0xff] %v901_v45 }
 0x2ae   : > { %v908_v46 = vld [vmem:[#allocation3] sm:$0xff]  ;;  %v2544_v47 = vmov 0   ;;  %v969_v35 = vld [vmem:[#allocation5 + $0x168] sm:$0xff]  ;;  %v967_v49 = vld [vmem:[#allocation5 + $0x158] sm:$0xff]  ;;  %v2545_v50 = vmov 0.0   ;;  %vm921_vm7 = vcmask 261120  }
 0x2af   : > { %2330 = vset.pattern.permute.xlu0 %v2544_v47  ;;  %2331 = vrcp.f32 %v908_v46  ;;  %v970_v48 = vld [vmem:[#allocation5 + $0x170] sm:$0xff]  ;;  %1123 = vmatprep.subr.mxu1 %v2545_v50  ;;  %v971_v38 = vld [vmem:[#allocation5 + $0x178] sm:$0xff]  ;;  %v964_v52 = vld [vmem:[#allocation5 + $0x140] sm:$0xff]  ;;  %vm2547_vm8 = vmmov 0  }
 0x2b0   : > { %1052 = vmatprep.subr.mxu0 %v970_v48  ;;  %v966_v51 = vld [vmem:[#allocation5 + $0x150] sm:$0xff]  ;;  %v968_v53 = vld [vmem:[#allocation5 + $0x160] sm:$0xff]  ;;  %1124 = vmatpush1.msra.mxu1 %v971_v38  ;;  %v963_v54 = vld [vmem:[#allocation5 + $0x138] sm:$0xff] }
 0x2b1   : > { %1053 = vmatpush1.msra.mxu0 %v969_v35  ;;  %1125 = vmatprep.subr.mxu1 %v2545_v50  ;;  %v961_v55 = vld [vmem:[#allocation5 + $0x128] sm:$0xff]  ;;  %v960_v57 = vld [vmem:[#allocation5 + $0x120] sm:$0xff]  ;;  %v958_v58 = vld [vmem:[#allocation5 + $0x110] sm:$0xff] }
 0x2b2   : > { %1054 = vmatprep.subr.mxu0 %v967_v49  ;;  %v965_v56 = vld [vmem:[#allocation5 + $0x148] sm:$0xff]  ;;  %1126 = vmatpush1.msra.mxu1 %v968_v53  ;;  %v962_v59 = vld [vmem:[#allocation5 + $0x130] sm:$0xff]  ;;  %v955_v61 = vld [vmem:[#allocation5 + $0xf8] sm:$0xff] }
 0x2b3   : > { %1055 = vmatpush1.msra.mxu0 %v966_v51  ;;  %1127 = vmatprep.subr.mxu1 %v2545_v50  ;;  %v957_v60 = vld [vmem:[#allocation5 + $0x108] sm:$0xff]  ;;  %v959_v62 = vld [vmem:[#allocation5 + $0x118] sm:$0xff]  ;;  %v954_v63 = vld [vmem:[#allocation5 + $0xf0] sm:$0xff] }
 0x2b4   : > { %1056 = vmatprep.subr.mxu0 %v964_v52  ;;  %1128 = vmatpush1.msra.mxu1 %v965_v56  ;;  %v952_v0 = vld [vmem:[#allocation5 + $0xe0] sm:$0xff]  ;;  %v951_v2 = vld [vmem:[#allocation5 + $0xd8] sm:$0xff]  ;;  %v949_v3 = vld [vmem:[#allocation5 + $0xc8] sm:$0xff] }
 0x2b5   : > { %1057 = vmatpush1.msra.mxu0 %v963_v54  ;;  %1129 = vmatprep.subr.mxu1 %v2545_v50  ;;  %v956_v1 = vld [vmem:[#allocation5 + $0x100] sm:$0xff]  ;;  %v953_v4 = vld [vmem:[#allocation5 + $0xe8] sm:$0xff]  ;;  %v946_v6 = vld [vmem:[#allocation5 + $0xb0] sm:$0xff] }
 0x2b6   : > { %1058 = vmatprep.subr.mxu0 %v961_v55  ;;  %1130 = vmatpush1.msra.mxu1 %v962_v59  ;;  %v948_v5 = vld [vmem:[#allocation5 + $0xc0] sm:$0xff]  ;;  %v950_v7 = vld [vmem:[#allocation5 + $0xd0] sm:$0xff]  ;;  %v945_v8 = vld [vmem:[#allocation5 + $0xa8] sm:$0xff] }
 0x2b7   : > { %1059 = vmatpush1.msra.mxu0 %v960_v57  ;;  %1131 = vmatprep.subr.mxu1 %v2545_v50  ;;  %v943_v9 = vld [vmem:[#allocation5 + $0x98] sm:$0xff]  ;;  %v942_v11 = vld [vmem:[#allocation5 + $0x90] sm:$0xff]  ;;  %v940_v12 = vld [vmem:[#allocation5 + $0x80] sm:$0xff] }
 0x2b8   : > { %1060 = vmatprep.subr.mxu0 %v958_v58  ;;  %1132 = vmatpush1.msra.mxu1 %v959_v62  ;;  %v947_v10 = vld [vmem:[#allocation5 + $0xb8] sm:$0xff]  ;;  %v944_v13 = vld [vmem:[#allocation5 + $0xa0] sm:$0xff]  ;;  %v937_v15 = vld [vmem:[#allocation5 + $0x68] sm:$0xff] }
 0x2b9   : > { %1061 = vmatpush1.msra.mxu0 %v957_v60  ;;  %1133 = vmatprep.subr.mxu1 %v2545_v50  ;;  %v939_v14 = vld [vmem:[#allocation5 + $0x78] sm:$0xff]  ;;  %v941_v16 = vld [vmem:[#allocation5 + $0x88] sm:$0xff]  ;;  %v936_v17 = vld [vmem:[#allocation5 + $0x60] sm:$0xff] }
 0x2ba   : > { %1062 = vmatprep.subr.mxu0 %v955_v61  ;;  %1134 = vmatpush1.msra.mxu1 %v956_v1  ;;  %v934_v18 = vld [vmem:[#allocation5 + $0x50] sm:$0xff]  ;;  %v933_v20 = vld [vmem:[#allocation5 + $0x48] sm:$0xff]  ;;  %v931_v21 = vld [vmem:[#allocation5 + $0x38] sm:$0xff] }
 0x2bb   : > { %1063 = vmatpush1.msra.mxu0 %v954_v63  ;;  %1135 = vmatprep.subr.mxu1 %v2545_v50  ;;  %v938_v19 = vld [vmem:[#allocation5 + $0x70] sm:$0xff]  ;;  %v935_v22 = vld [vmem:[#allocation5 + $0x58] sm:$0xff]  ;;  %v928_v24 = vld [vmem:[#allocation5 + $0x20] sm:$0xff] }
 0x2bc   : > { %v2332_v37 = vpop.eup %2331  ;;  %1064 = vmatprep.subr.mxu0 %v952_v0  ;;  %1136 = vmatpush1.msra.mxu1 %v953_v4  ;;  %v930_v23 = vld [vmem:[#allocation5 + $0x30] sm:$0xff]  ;;  %v932_v25 = vld [vmem:[#allocation5 + $0x40] sm:$0xff]  ;;  %v927_v26 = vld [vmem:[#allocation5 + $0x18] sm:$0xff] }
 0x2bd   : > { %912 = vperm.xlu0 %2330, %v2332_v37   ;;  %1065 = vmatpush1.msra.mxu0 %v951_v2  ;;  %v925_v27 = vld [vmem:[#allocation5 + $0x8] sm:$0xff]  ;;  %v924_v29 = vld [vmem:[#allocation5] sm:$0xff]  ;;  %v982_v30 = vld [vmem:[#allocation5 + $0x1d0] sm:$0xff] }
 0x2be   : > { %1066 = vmatprep.subr.mxu0 %v949_v3  ;;  %1137 = vmatprep.subr.mxu1 %v2545_v50  ;;  %v929_v28 = vld [vmem:[#allocation5 + $0x28] sm:$0xff]  ;;  %v926_v31 = vld [vmem:[#allocation5 + $0x10] sm:$0xff]  ;;  %v979_v33 = vld [vmem:[#allocation5 + $0x1b8] sm:$0xff] }
 0x2bf   : > { %1067 = vmatpush1.msra.mxu0 %v948_v5  ;;  %1138 = vmatpush1.msra.mxu1 %v950_v7  ;;  %v981_v32 = vld [vmem:[#allocation5 + $0x1c8] sm:$0xff]  ;;  %v983_v34 = vld [vmem:[#allocation5 + $0x1d8] sm:$0xff]  ;;  %v978_v36 = vld [vmem:[#allocation5 + $0x1b0] sm:$0xff] }
 0x2c0   : > { %1068 = vmatprep.subr.mxu0 %v946_v6  ;;  %1139 = vmatprep.subr.mxu1 %v2545_v50  ;;  %v976_v39 = vld [vmem:[#allocation5 + $0x1a0] sm:$0xff]  ;;  %v975_v41 = vld [vmem:[#allocation5 + $0x198] sm:$0xff]  ;;  %v973_v42 = vld [vmem:[#allocation5 + $0x188] sm:$0xff] }
 0x2c1   : > { %1069 = vmatpush1.msra.mxu0 %v945_v8  ;;  %1140 = vmatpush1.msra.mxu1 %v947_v10  ;;  %v980_v40 = vld [vmem:[#allocation5 + $0x1c0] sm:$0xff]  ;;  %v977_v43 = vld [vmem:[#allocation5 + $0x1a8] sm:$0xff]  ;;  %v974_v45 = vld [vmem:[#allocation5 + $0x190] sm:$0xff] }
 0x2c2   : > { %1070 = vmatprep.subr.mxu0 %v943_v9  ;;  %1141 = vmatprep.subr.mxu1 %v2545_v50  ;;  %v972_v44 = vld [vmem:[#allocation5 + $0x180] sm:$0xff]  ;;  %v1030_v46 = vld [vmem:[#allocation8 + $0x170] sm:$0xff]  ;;  %v907_v47 = vld [vmem:[#allocation4] sm:$0xff] }
 0x2c3   : > { %1071 = vmatpush1.msra.mxu0 %v942_v11  ;;  %1142 = vmatpush1.msra.mxu1 %v944_v13  ;;  %v916_v49 = vld [vmem:[%s3072_s2] sm:$0xff]  ;;  %v1027_v52 = vld [vmem:[#allocation8 + $0x158] sm:$0xff]  ;;  %v1026_v54 = vld [vmem:[#allocation8 + $0x150] sm:$0xff] }
 0x2c4   : > { %1072 = vmatprep.subr.mxu0 %v940_v12  ;;  %1143 = vmatprep.subr.mxu1 %v2545_v50  ;;  %v1029_v38 = vld [vmem:[#allocation8 + $0x168] sm:$0xff]  ;;  %v1031_v53 = vld [vmem:[#allocation8 + $0x178] sm:$0xff]  ;;  %v1024_v55 = vld [vmem:[#allocation8 + $0x140] sm:$0xff] }
 0x2c5   : > { %1073 = vmatpush1.msra.mxu0 %v939_v14  ;;  %1144 = vmatpush1.msra.mxu1 %v941_v16  ;;  %v1028_v56 = vld [vmem:[#allocation8 + $0x160] sm:$0xff]  ;;  %v1023_v57 = vld [vmem:[#allocation8 + $0x138] sm:$0xff]  ;;  %v1021_v58 = vld [vmem:[#allocation8 + $0x128] sm:$0xff] }
 0x2c6   : > { %1074 = vmatprep.subr.mxu0 %v937_v15  ;;  %1145 = vmatprep.subr.mxu1 %v2545_v50  ;;  %v1025_v59 = vld [vmem:[#allocation8 + $0x148] sm:$0xff]  ;;  %v1020_v60 = vld [vmem:[#allocation8 + $0x120] sm:$0xff]  ;;  %v1018_v61 = vld [vmem:[#allocation8 + $0x110] sm:$0xff] }
 0x2c7   : > { %1075 = vmatpush1.msra.mxu0 %v936_v17  ;;  %1146 = vmatpush1.msra.mxu1 %v938_v19  ;;  %v1022_v62 = vld [vmem:[#allocation8 + $0x130] sm:$0xff]  ;;  %v1017_v63 = vld [vmem:[#allocation8 + $0x108] sm:$0xff]  ;;  %v1015_v0 = vld [vmem:[#allocation8 + $0xf8] sm:$0xff] }
 0x2c8   : > { %1076 = vmatprep.subr.mxu0 %v934_v18  ;;  %1147 = vmatprep.subr.mxu1 %v2545_v50  ;;  %v1019_v1 = vld [vmem:[#allocation8 + $0x118] sm:$0xff]  ;;  %v1014_v2 = vld [vmem:[#allocation8 + $0xf0] sm:$0xff]  ;;  %v1012_v3 = vld [vmem:[#allocation8 + $0xe0] sm:$0xff] }
 0x2c9   : > { %1077 = vmatpush1.msra.mxu0 %v933_v20  ;;  %1148 = vmatpush1.msra.mxu1 %v935_v22  ;;  %v1016_v4 = vld [vmem:[#allocation8 + $0x100] sm:$0xff]  ;;  %v1011_v5 = vld [vmem:[#allocation8 + $0xd8] sm:$0xff]  ;;  %v1009_v6 = vld [vmem:[#allocation8 + $0xc8] sm:$0xff] }
 0x2ca   : > { %1078 = vmatprep.subr.mxu0 %v931_v21  ;;  %1149 = vmatprep.subr.mxu1 %v2545_v50  ;;  %v1013_v7 = vld [vmem:[#allocation8 + $0xe8] sm:$0xff]  ;;  %v1008_v8 = vld [vmem:[#allocation8 + $0xc0] sm:$0xff]  ;;  %v1006_v9 = vld [vmem:[#allocation8 + $0xb0] sm:$0xff] }
 0x2cb   : > { %1079 = vmatpush1.msra.mxu0 %v930_v23  ;;  %1150 = vmatpush1.msra.mxu1 %v932_v25  ;;  %v1010_v10 = vld [vmem:[#allocation8 + $0xd0] sm:$0xff]  ;;  %v1005_v11 = vld [vmem:[#allocation8 + $0xa8] sm:$0xff]  ;;  %v1003_v12 = vld [vmem:[#allocation8 + $0x98] sm:$0xff] }
 0x2cc   : > { %1080 = vmatprep.subr.mxu0 %v928_v24  ;;  %1151 = vmatprep.subr.mxu1 %v2545_v50  ;;  %v1007_v13 = vld [vmem:[#allocation8 + $0xb8] sm:$0xff]  ;;  %v1002_v14 = vld [vmem:[#allocation8 + $0x90] sm:$0xff]  ;;  %v1000_v15 = vld [vmem:[#allocation8 + $0x80] sm:$0xff] }
 0x2cd   : > { %1081 = vmatpush1.msra.mxu0 %v927_v26  ;;  %1152 = vmatpush1.msra.mxu1 %v929_v28  ;;  %v1004_v16 = vld [vmem:[#allocation8 + $0xa0] sm:$0xff]  ;;  %v999_v17 = vld [vmem:[#allocation8 + $0x78] sm:$0xff]  ;;  %v997_v18 = vld [vmem:[#allocation8 + $0x68] sm:$0xff] }
 0x2ce   : > { %1082 = vmatprep.subr.mxu0 %v925_v27  ;;  %1153 = vmatprep.subr.mxu1 %v2545_v50  ;;  %v1001_v19 = vld [vmem:[#allocation8 + $0x88] sm:$0xff]  ;;  %v996_v20 = vld [vmem:[#allocation8 + $0x60] sm:$0xff]  ;;  %v994_v21 = vld [vmem:[#allocation8 + $0x50] sm:$0xff] }
 0x2cf   : > { %1083 = vmatpush1.msra.mxu0 %v924_v29  ;;  %1154 = vmatpush1.msra.mxu1 %v926_v31  ;;  %v998_v22 = vld [vmem:[#allocation8 + $0x70] sm:$0xff]  ;;  %v993_v23 = vld [vmem:[#allocation8 + $0x48] sm:$0xff]  ;;  %v991_v24 = vld [vmem:[#allocation8 + $0x38] sm:$0xff] }
 0x2d0   : > { %1108 = vmatprep.subr.mxu0 %v982_v30  ;;  %1179 = vmatprep.subr.mxu1 %v2545_v50  ;;  %v995_v25 = vld [vmem:[#allocation8 + $0x58] sm:$0xff]  ;;  %v990_v26 = vld [vmem:[#allocation8 + $0x30] sm:$0xff]  ;;  %v988_v27 = vld [vmem:[#allocation8 + $0x20] sm:$0xff] }
 0x2d1   : > { %1109 = vmatpush2.msra.mxu0 %v981_v32  ;;  %1180 = vmatpush2.msra.mxu1 %v983_v34  ;;  %v992_v28 = vld [vmem:[#allocation8 + $0x40] sm:$0xff]  ;;  %v987_v29 = vld [vmem:[#allocation8 + $0x18] sm:$0xff]  ;;  %v985_v30 = vld [vmem:[#allocation8 + $0x8] sm:$0xff] }
 0x2d2   : > { %1110 = vmatprep.subr.mxu0 %v979_v33  ;;  %1181 = vmatprep.subr.mxu1 %v2545_v50  ;;  %v989_v31 = vld [vmem:[#allocation8 + $0x28] sm:$0xff]  ;;  %v984_v32 = vld [vmem:[#allocation8] sm:$0xff]  ;;  %v986_v34 = vld [vmem:[#allocation8 + $0x10] sm:$0xff] }
 0x2d3   : > { %1111 = vmatpush2.msra.mxu0 %v978_v36  ;;  %1182 = vmatpush2.msra.mxu1 %v980_v40  ;;  %v2964_v33 = vld [vmem:[%s3071_s1] sm:$0xff]  ;;  %v1419_v36 = vld [vmem:[#allocation10 + $0x170] sm:$0xff]  ;;  %v1416_v40 = vld [vmem:[#allocation10 + $0x158] sm:$0xff] }
 0x2d4   : > { %1112 = vmatprep.subr.mxu0 %v976_v39  ;;  %1183 = vmatprep.subr.mxu1 %v2545_v50  ;;  %v1418_v39 = vld [vmem:[#allocation10 + $0x168] sm:$0xff] }
 0x2d5   : > { %1113 = vmatpush2.msra.mxu0 %v975_v41  ;;  %1184 = vmatpush2.msra.mxu1 %v977_v43  ;;  %v1420_v41 = vld [vmem:[#allocation10 + $0x178] sm:$0xff]  ;;  %v1413_v43 = vld [vmem:[#allocation10 + $0x140] sm:$0xff] }
 0x2d6   : > { %1114 = vmatprep.subr.mxu0 %v973_v42  ;;  %1185 = vmatprep.subr.mxu1 %v2545_v50  ;;  %v1415_v42 = vld [vmem:[#allocation10 + $0x150] sm:$0xff] }
 0x2d7   : > { %1115 = vmatpush2.msra.mxu0 %v972_v44  ;;  %1186 = vmatpush2.msra.mxu1 %v974_v45  ;;  %v1417_v44 = vld [vmem:[#allocation10 + $0x160] sm:$0xff]  ;;  %v1412_v45 = vld [vmem:[#allocation10 + $0x138] sm:$0xff] }
 0x2d8   : > { %1209 = vmatprep.subr.mxu0 %v1030_v46  ;;  %2133 = vmatprep.subr.mxu1 %v2545_v50  ;;  %v1410_v46 = vld [vmem:[#allocation10 + $0x128] sm:$0xff] }
 0x338   : > { %v913_v48 = vpop.permute.xlu0 %912 }
 0x339   : > { %v915_v35 = vmul.f32 %v913_v48, %v907_v47  ;;  %v1414_v47 = vld [vmem:[#allocation10 + $0x148] sm:$0xff]  ;;  %v1409_v48 = vld [vmem:[#allocation10 + $0x120] sm:$0xff] }
 0x33b   : > { %918 = vrot.lane.b32.xlu0 %v915_v35, %s2546_s20  ;;  %v1407_v35 = vld [vmem:[#allocation10 + $0x110] sm:$0xff] }
 0x3ad   : > { %v919_v37 = vpop.permute.xlu0 %918 }
 0x3ae   : > { %1939 = vmatprep.mubr.msk.f32.mxu0 %vm921_vm7, %v919_v37  ;;  %1940 = vmatprep.mubr.msk.f32.mxu1 %vm921_vm7, %v919_v37  ;;  %v922_v51 = vsel %vm921_vm7, %v916_v49, %v919_v37  ;;  %v1411_v49 = vld [vmem:[#allocation10 + $0x130] sm:$0xff]  ;;  %v1406_v37 = vld [vmem:[#allocation10 + $0x108] sm:$0xff] }
 0x3af   : > { %1117 = vmatmul.mubr.f32.vlgmr.msra.gmra.mxu0 %v922_v51  ;;  %1188 = vmatmul.mubr.f32.vlgmr.msra.gmra.mxu1 %v922_v51  ;;  %v1408_v51 = vld [vmem:[#allocation10 + $0x118] sm:$0xff] }
 0x3b0   : > { %1210 = vmatpush1.msra.mxu0 %v1029_v38  ;;  %1273 = vmatprep.mubr.f32.mxu0 %v2545_v50  ;;  %v1404_v38 = vld [vmem:[#allocation10 + $0xf8] sm:$0xff] }
 0x3b1   : > { %1211 = vmatprep.subr.mxu0 %v1027_v52  ;;  %2134 = vmatpush3.msra.mxu1 %v1031_v53  ;;  %v1403_v52 = vld [vmem:[#allocation10 + $0xf0] sm:$0xff]  ;;  %v1401_v53 = vld [vmem:[#allocation10 + $0xe0] sm:$0xff] }
 0x3b2   : > { %1212 = vmatpush1.msra.mxu0 %v1026_v54  ;;  %2135 = vmatprep.subr.mxu1 %v2545_v50  ;;  %v1405_v54 = vld [vmem:[#allocation10 + $0x100] sm:$0xff] }
 0x3b3   : > { %1213 = vmatprep.subr.mxu0 %v1024_v55  ;;  %2136 = vmatpush3.msra.mxu1 %v1028_v56  ;;  %v1400_v55 = vld [vmem:[#allocation10 + $0xd8] sm:$0xff]  ;;  %v1398_v56 = vld [vmem:[#allocation10 + $0xc8] sm:$0xff] }
 0x3b4   : > { %1214 = vmatpush1.msra.mxu0 %v1023_v57  ;;  %2137 = vmatprep.subr.mxu1 %v2545_v50  ;;  %v1402_v57 = vld [vmem:[#allocation10 + $0xe8] sm:$0xff] }
 0x3b5   : > { %1215 = vmatprep.subr.mxu0 %v1021_v58  ;;  %2138 = vmatpush3.msra.mxu1 %v1025_v59  ;;  %v1397_v58 = vld [vmem:[#allocation10 + $0xc0] sm:$0xff]  ;;  %v1395_v59 = vld [vmem:[#allocation10 + $0xb0] sm:$0xff] }
 0x3b6   : > { %1216 = vmatpush1.msra.mxu0 %v1020_v60  ;;  %2139 = vmatprep.subr.mxu1 %v2545_v50  ;;  %v1399_v60 = vld [vmem:[#allocation10 + $0xd0] sm:$0xff] }
 0x3b7   : > { %1217 = vmatprep.subr.mxu0 %v1018_v61  ;;  %2140 = vmatpush3.msra.mxu1 %v1022_v62  ;;  %v1394_v61 = vld [vmem:[#allocation10 + $0xa8] sm:$0xff]  ;;  %v1392_v62 = vld [vmem:[#allocation10 + $0x98] sm:$0xff] }
 0x3b8   : > { %1218 = vmatpush1.msra.mxu0 %v1017_v63  ;;  %2141 = vmatprep.subr.mxu1 %v2545_v50  ;;  %v1396_v63 = vld [vmem:[#allocation10 + $0xb8] sm:$0xff] }
 0x3b9   : > { %1219 = vmatprep.subr.mxu0 %v1015_v0  ;;  %2142 = vmatpush3.msra.mxu1 %v1019_v1  ;;  %v1391_v0 = vld [vmem:[#allocation10 + $0x90] sm:$0xff]  ;;  %v1389_v1 = vld [vmem:[#allocation10 + $0x80] sm:$0xff] }
 0x3ba   : > { %1220 = vmatpush1.msra.mxu0 %v1014_v2  ;;  %2143 = vmatprep.subr.mxu1 %v2545_v50  ;;  %v1393_v2 = vld [vmem:[#allocation10 + $0xa0] sm:$0xff] }
 0x3bb   : > { %1221 = vmatprep.subr.mxu0 %v1012_v3  ;;  %2144 = vmatpush3.msra.mxu1 %v1016_v4  ;;  %v1388_v3 = vld [vmem:[#allocation10 + $0x78] sm:$0xff]  ;;  %v1386_v4 = vld [vmem:[#allocation10 + $0x68] sm:$0xff] }
 0x3bc   : > { %1222 = vmatpush1.msra.mxu0 %v1011_v5  ;;  %2145 = vmatprep.subr.mxu1 %v2545_v50  ;;  %v1390_v5 = vld [vmem:[#allocation10 + $0x88] sm:$0xff] }
 0x3bd   : > { %1223 = vmatprep.subr.mxu0 %v1009_v6  ;;  %2146 = vmatpush3.msra.mxu1 %v1013_v7  ;;  %v1385_v6 = vld [vmem:[#allocation10 + $0x60] sm:$0xff]  ;;  %v1383_v7 = vld [vmem:[#allocation10 + $0x50] sm:$0xff] }
 0x3be   : > { %1224 = vmatpush1.msra.mxu0 %v1008_v8  ;;  %2147 = vmatprep.subr.mxu1 %v2545_v50  ;;  %v1387_v8 = vld [vmem:[#allocation10 + $0x70] sm:$0xff] }
 0x3bf   : > { %1225 = vmatprep.subr.mxu0 %v1006_v9  ;;  %2148 = vmatpush3.msra.mxu1 %v1010_v10  ;;  %v1382_v9 = vld [vmem:[#allocation10 + $0x48] sm:$0xff]  ;;  %v1380_v10 = vld [vmem:[#allocation10 + $0x38] sm:$0xff] }
 0x3c0   : > { %1226 = vmatpush1.msra.mxu0 %v1005_v11  ;;  %2149 = vmatprep.subr.mxu1 %v2545_v50  ;;  %v1384_v11 = vld [vmem:[#allocation10 + $0x58] sm:$0xff] }
 0x3c1   : > { %1227 = vmatprep.subr.mxu0 %v1003_v12  ;;  %2150 = vmatpush3.msra.mxu1 %v1007_v13  ;;  %v1379_v12 = vld [vmem:[#allocation10 + $0x30] sm:$0xff]  ;;  %v1377_v13 = vld [vmem:[#allocation10 + $0x20] sm:$0xff] }
 0x3c2   : > { %1228 = vmatpush1.msra.mxu0 %v1002_v14  ;;  %2151 = vmatprep.subr.mxu1 %v2545_v50  ;;  %v1381_v14 = vld [vmem:[#allocation10 + $0x40] sm:$0xff] }
 0x3c3   : > { %1229 = vmatprep.subr.mxu0 %v1000_v15  ;;  %2152 = vmatpush3.msra.mxu1 %v1004_v16  ;;  %v1376_v15 = vld [vmem:[#allocation10 + $0x18] sm:$0xff]  ;;  %v1374_v16 = vld [vmem:[#allocation10 + $0x8] sm:$0xff] }
 0x3c4   : > { %1230 = vmatpush1.msra.mxu0 %v999_v17  ;;  %2153 = vmatprep.subr.mxu1 %v2545_v50  ;;  %v1378_v17 = vld [vmem:[#allocation10 + $0x28] sm:$0xff] }
 0x3c5   : > { %1231 = vmatprep.subr.mxu0 %v997_v18  ;;  %2154 = vmatpush3.msra.mxu1 %v1001_v19  ;;  %v1373_v18 = vld [vmem:[#allocation10] sm:$0xff]  ;;  %v1375_v19 = vld [vmem:[#allocation10 + $0x10] sm:$0xff] }
 0x3c6   : > { %1232 = vmatpush1.msra.mxu0 %v996_v20  ;;  %2155 = vmatprep.subr.mxu1 %v2545_v50  ;;  %v1467_v20 = vld [vmem:[#allocation11 + $0x170] sm:$0xff] }
 0x3c7   : > { %1233 = vmatprep.subr.mxu0 %v994_v21  ;;  %2156 = vmatpush3.msra.mxu1 %v998_v22 }
 0x3c8   : > { %1234 = vmatpush1.msra.mxu0 %v993_v23  ;;  %2157 = vmatprep.subr.mxu1 %v2545_v50  ;;  %v1035_v23 = vlaneseq }
 0x3c9   : > { %1235 = vmatprep.subr.mxu0 %v991_v24  ;;  %2158 = vmatpush3.msra.mxu1 %v995_v25 }
 0x3ca   : > { %1236 = vmatpush1.msra.mxu0 %v990_v26  ;;  %2159 = vmatprep.subr.mxu1 %v2545_v50  ;;  %v1036_v24 = vshrl.u32 %v1035_v23, 7  ;;  %v1032_v26 = vld [vmem:[%s3078_s8] sm:$0x7]  ;;  %v1445_v23 = vld [vmem:[#allocation11 + $0xc0] sm:$0xff] }
 0x3cb   : > { %1237 = vmatprep.subr.mxu0 %v988_v27  ;;  %2160 = vmatpush3.msra.mxu1 %v992_v28  ;;  %v1033_v28 = vld [vmem:[%s3079_s9] sm:$0x7] }
 0x3cc   : > { %1238 = vmatpush1.msra.mxu0 %v987_v29  ;;  %2161 = vmatprep.subr.mxu1 %v2545_v50  ;;  %v2992_v25 = vsub.s32 0, %v1036_v24 }
 0x3cd   : > { %1239 = vmatprep.subr.mxu0 %v985_v30  ;;  %2162 = vmatpush3.msra.mxu1 %v989_v31 }
 0x3ce   : > { %1240 = vmatpush1.msra.mxu0 %v984_v32  ;;  %2163 = vmatprep.subr.mxu1 %v2545_v50  ;;  %v1038_v29 = vrot.slane %v1032_v26, %v2992_v25  ;;  %v1197_v30 = vrot.slane %v1033_v28, %v2992_v25  ;;  %v3002_v32 = vsub.s32 1, %v1036_v24 }
 0x3cf   : > { %1274 = vmatmul.mubr.f32.vlgmr.msra.gmra.mxu0 %v2964_v33  ;;  %2164 = vmatpush3.msra.mxu1 %v986_v34 }
 0x3d0   : > { %2165 = vmatprep.mubr.msk.f32.mxu1 %vm2547_vm8, %v2545_v50  ;;  %2168 = vmatprep.subr.mxu1 %v2545_v50 }
 0x3d1   : > { %2166 = vmatmul.mubr.f32.vlgmr.msra.gmra.mxu1 %v2964_v33  ;;  %1551 = vmatprep.mubr.f32.mxu0 %v2545_v50 }
 0x3d2   : > { %2200 = vmatprep.mubr.msk.f32.mxu1 %vm2547_vm8, %v2545_v50  ;;  %1487 = vmatprep.subr.mxu0 %v1419_v36 }
 0x3d3   : > { %1488 = vmatpush1.msra.mxu0 %v1418_v39  ;;  %2169 = vmatpush3.msra.mxu1 %v1420_v41 }
 0x3d4   : > { %1489 = vmatprep.subr.mxu0 %v1416_v40  ;;  %2170 = vmatprep.subr.mxu1 %v2545_v50  ;;  %v1201_v40 = vrot.slane %v1033_v28, %v3002_v32 }
 0x3d5   : > { %1490 = vmatpush1.msra.mxu0 %v1415_v42  ;;  %2171 = vmatpush3.msra.mxu1 %v1417_v44 }
 0x3d6   : > { %1491 = vmatprep.subr.mxu0 %v1413_v43  ;;  %2172 = vmatprep.subr.mxu1 %v2545_v50  ;;  %v1042_v43 = vrot.slane %v1032_v26, %v3002_v32 }
 0x3d7   : > { %1492 = vmatpush1.msra.mxu0 %v1412_v45  ;;  %2173 = vmatpush3.msra.mxu1 %v1414_v47 }
 0x3d8   : > { %1493 = vmatprep.subr.mxu0 %v1410_v46  ;;  %2174 = vmatprep.subr.mxu1 %v2545_v50 }
 0x3d9   : > { %1494 = vmatpush1.msra.mxu0 %v1409_v48  ;;  %2175 = vmatpush3.msra.mxu1 %v1411_v49 }
 0x3da   : > { %1495 = vmatprep.subr.mxu0 %v1407_v35  ;;  %2176 = vmatprep.subr.mxu1 %v2545_v50 }
 0x3db   : > { %1496 = vmatpush1.msra.mxu0 %v1406_v37  ;;  %2177 = vmatpush3.msra.mxu1 %v1408_v51  ;;  %v3006_v51 = vsub.s32 2, %v1036_v24  ;;  %v1443_v24 = vld [vmem:[#allocation11 + $0xb0] sm:$0xff] }
 0x3dc   : > { %1497 = vmatprep.subr.mxu0 %v1404_v38  ;;  %2178 = vmatprep.subr.mxu1 %v2545_v50 }
 0x3dd   : > { %1498 = vmatpush1.msra.mxu0 %v1403_v52  ;;  %2179 = vmatpush3.msra.mxu1 %v1405_v54  ;;  %v1205_v52 = vrot.slane %v1033_v28, %v3006_v51  ;;  %v1046_v54 = vrot.slane %v1032_v26, %v3006_v51  ;;  %v1447_v26 = vld [vmem:[#allocation11 + $0xd0] sm:$0xff]  ;;  %v1440_v28 = vld [vmem:[#allocation11 + $0x98] sm:$0xff] }
 0x3de   : > { %1499 = vmatprep.subr.mxu0 %v1401_v53  ;;  %2180 = vmatprep.subr.mxu1 %v2545_v50 }
 0x3df   : > { %1500 = vmatpush1.msra.mxu0 %v1400_v55  ;;  %2181 = vmatpush3.msra.mxu1 %v1402_v57 }
 0x3e0   : > { %1501 = vmatprep.subr.mxu0 %v1398_v56  ;;  %2182 = vmatprep.subr.mxu1 %v2545_v50 }
 0x3e1   : > { %1502 = vmatpush1.msra.mxu0 %v1397_v58  ;;  %2183 = vmatpush3.msra.mxu1 %v1399_v60 }
 0x3e2   : > { %1503 = vmatprep.subr.mxu0 %v1395_v59  ;;  %2184 = vmatprep.subr.mxu1 %v2545_v50 }
 0x3e3   : > { %1504 = vmatpush1.msra.mxu0 %v1394_v61  ;;  %2185 = vmatpush3.msra.mxu1 %v1396_v63 }
 0x3e4   : > { %1505 = vmatprep.subr.mxu0 %v1392_v62  ;;  %2186 = vmatprep.subr.mxu1 %v2545_v50 }
 0x3e5   : > { %1506 = vmatpush1.msra.mxu0 %v1391_v0  ;;  %2187 = vmatpush3.msra.mxu1 %v1393_v2 }
 0x3e6   : > { %1507 = vmatprep.subr.mxu0 %v1389_v1  ;;  %2188 = vmatprep.subr.mxu1 %v2545_v50 }
 0x3e7   : > { %1508 = vmatpush1.msra.mxu0 %v1388_v3  ;;  %2189 = vmatpush3.msra.mxu1 %v1390_v5  ;;  %v1466_v3 = vld [vmem:[#allocation11 + $0x168] sm:$0xff]  ;;  %v1468_v5 = vld [vmem:[#allocation11 + $0x178] sm:$0xff] }
 0x3e8   : > { %1509 = vmatprep.subr.mxu0 %v1386_v4  ;;  %2190 = vmatprep.subr.mxu1 %v2545_v50  ;;  %v1464_v4 = vld [vmem:[#allocation11 + $0x158] sm:$0xff] }
 0x3e9   : > { %1510 = vmatpush1.msra.mxu0 %v1385_v6  ;;  %2191 = vmatpush3.msra.mxu1 %v1387_v8  ;;  %v1463_v6 = vld [vmem:[#allocation11 + $0x150] sm:$0xff]  ;;  %v1465_v8 = vld [vmem:[#allocation11 + $0x160] sm:$0xff] }
 0x3ea   : > { %1511 = vmatprep.subr.mxu0 %v1383_v7  ;;  %2192 = vmatprep.subr.mxu1 %v2545_v50  ;;  %v1461_v7 = vld [vmem:[#allocation11 + $0x140] sm:$0xff] }
 0x3eb   : > { %1512 = vmatpush1.msra.mxu0 %v1382_v9  ;;  %2193 = vmatpush3.msra.mxu1 %v1384_v11  ;;  %v1460_v9 = vld [vmem:[#allocation11 + $0x138] sm:$0xff]  ;;  %v1457_v11 = vld [vmem:[#allocation11 + $0x120] sm:$0xff] }
 0x3ec   : > { %1513 = vmatprep.subr.mxu0 %v1380_v10  ;;  %2194 = vmatprep.subr.mxu1 %v2545_v50  ;;  %v1458_v10 = vld [vmem:[#allocation11 + $0x128] sm:$0xff] }
 0x3ed   : > { %1514 = vmatpush1.msra.mxu0 %v1379_v12  ;;  %2195 = vmatpush3.msra.mxu1 %v1381_v14  ;;  %v1455_v12 = vld [vmem:[#allocation11 + $0x110] sm:$0xff]  ;;  %v1454_v14 = vld [vmem:[#allocation11 + $0x108] sm:$0xff] }
 0x3ee   : > { %1515 = vmatprep.subr.mxu0 %v1377_v13  ;;  %2196 = vmatprep.subr.mxu1 %v2545_v50  ;;  %v1459_v13 = vld [vmem:[#allocation11 + $0x130] sm:$0xff] }
 0x3ef   : > { %1516 = vmatpush1.msra.mxu0 %v1376_v15  ;;  %2197 = vmatpush3.msra.mxu1 %v1378_v17  ;;  %v1452_v15 = vld [vmem:[#allocation11 + $0xf8] sm:$0xff]  ;;  %v1451_v17 = vld [vmem:[#allocation11 + $0xf0] sm:$0xff] }
 0x3f0   : > { %1517 = vmatprep.subr.mxu0 %v1374_v16  ;;  %2198 = vmatprep.subr.mxu1 %v2545_v50  ;;  %v1456_v16 = vld [vmem:[#allocation11 + $0x118] sm:$0xff] }
 0x3f1   : > { %1518 = vmatpush1.msra.mxu0 %v1373_v18  ;;  %2199 = vmatpush3.msra.mxu1 %v1375_v19  ;;  %v1449_v18 = vld [vmem:[#allocation11 + $0xe0] sm:$0xff] }
 0x3f2   : > { %1644 = vmatprep.subr.mxu0 %v1467_v20  ;;  %2203 = vmatprep.subr.mxu1 %v2545_v50  ;;  %v1453_v19 = vld [vmem:[#allocation11 + $0x100] sm:$0xff]  ;;  %v1448_v20 = vld [vmem:[#allocation11 + $0xd8] sm:$0xff] }
 0x46f   : > { %v1189_v21 = vpop.f32.mrf.mxu1  ;;  %v1118_v27 = vpop.f32.mrf.mxu0 }
 0x470   : > { %v1119_v36 = vadd.f32 %v1118_v27, %v1038_v29  ;;  %v1190_v58 = vadd.f32 %v1189_v21, %v1046_v54  ;;  %v1446_v21 = vld [vmem:[#allocation11 + $0xc8] sm:$0xff]  ;;  %v1444_v29 = vld [vmem:[#allocation11 + $0xb8] sm:$0xff]  ;;  %v1423_v54 = vld [vmem:[#allocation11 + $0x10] sm:$0xff] }
 0x471   : > { %v1191_v22 = vpop.f32.mrf.mxu1  ;;  %v1120_v31 = vpop.f32.mrf.mxu0  ;;  %v1442_v27 = vld [vmem:[#allocation11 + $0xa8] sm:$0xff] }
 0x472   : > { %v1121_v48 = vadd.f32 %v1120_v31, %v1042_v43  ;;  %v1450_v22 = vld [vmem:[#allocation11 + $0xe8] sm:$0xff]  ;;  %v1437_v31 = vld [vmem:[#allocation11 + $0x80] sm:$0xff]  ;;  %v1435_v43 = vld [vmem:[#allocation11 + $0x70] sm:$0xff] }
 0x48f   : > { %v1275_v34 = vpop.f32.mrf.mxu0 }
 0x490   : > { %v1276_v39 = vadd.f32 %v1275_v34, %v1197_v30  ;;  %v1439_v30 = vld [vmem:[#allocation11 + $0x90] sm:$0xff]  ;;  %v1441_v34 = vld [vmem:[#allocation11 + $0xa0] sm:$0xff] }
 0x491   : > { %v1277_v41 = vpop.f32.mrf.mxu0  ;;  %v1346_v42 = vpop.f32.mrf.mxu1 }
 0x492   : > { %v1350_v44 = vadd.f32 %v1276_v39, %v1119_v36  ;;  %v1278_v47 = vadd.f32 %v1277_v41, %v1201_v40  ;;  %v1347_v56 = vadd.f32 %v1346_v42, %v1205_v52  ;;  %v1436_v36 = vld [vmem:[#allocation11 + $0x78] sm:$0xff]  ;;  %v1434_v39 = vld [vmem:[#allocation11 + $0x68] sm:$0xff]  ;;  %v1433_v41 = vld [vmem:[#allocation11 + $0x60] sm:$0xff] }
 0x493   : > { %v2167_v45 = vpop.f32.mrf.mxu1  ;;  %v1438_v40 = vld [vmem:[#allocation11 + $0x88] sm:$0xff]  ;;  %v1431_v42 = vld [vmem:[#allocation11 + $0x50] sm:$0xff]  ;;  %v1421_v52 = vld [vmem:[#allocation11] sm:$0xff] }
 0x494   : > { %v1941_v46 = vmul.f32 -1.442695, %v1350_v44  ;;  %v1357_v35 = vadd.f32 %v1278_v47, %v1121_v48  ;;  %v1430_v44 = vld [vmem:[#allocation11 + $0x48] sm:$0xff]  ;;  %v1428_v45 = vld [vmem:[#allocation11 + $0x38] sm:$0xff]  ;;  %v1427_v47 = vld [vmem:[#allocation11 + $0x30] sm:$0xff] }
 0x495   : > { %v1425_v48 = vld [vmem:[#allocation11 + $0x20] sm:$0xff] }
 0x496   : > { %2333 = vpow2.f32 %v1941_v46  ;;  %v1942_v49 = vmul.f32 -1.442695, %v1357_v35  ;;  %v1432_v46 = vld [vmem:[#allocation11 + $0x58] sm:$0xff]  ;;  %v1429_v35 = vld [vmem:[#allocation11 + $0x40] sm:$0xff] }
 0x498   : > { %2335 = vpow2.f32 %v1942_v49  ;;  %v1424_v49 = vld [vmem:[#allocation11 + $0x18] sm:$0xff] }
 0x4a3   : > { %v2334_v37 = vpop.eup %2333 }
 0x4a4   : > { %v1354_v38 = vadd.f32 1.0, %v2334_v37  ;;  %v1422_v37 = vld [vmem:[#allocation11 + $0x8] sm:$0xff] }
 0x4a5   : > { %v2336_v53 = vpop.eup %2335 }
 0x4a6   : > { %2337 = vrcp.f32 %v1354_v38  ;;  %v1361_v55 = vadd.f32 1.0, %v2336_v53  ;;  %v1426_v38 = vld [vmem:[#allocation11 + $0x28] sm:$0xff]  ;;  %v1943_v53 = vld [vmem:[%s3071_s1 + $0x8] sm:$0xff] }
 0x4a8   : > { %2339 = vrcp.f32 %v1361_v55 }
 0x4b3   : > { %v2338_v57 = vpop.eup %2337 }
 0x4b4   : > { %v1364_v59 = vmul.f32 %v2338_v57, %v1347_v56  ;;  %v1469_v57 = vld [vmem:[%s3082_s12] sm:$0x7] }
 0x4b5   : > { %v2340_v61 = vpop.eup %2339 }
 0x4b6   : > { %v1365_v60 = vadd.f32 %v1364_v59, %v1190_v58  ;;  %v1367_v62 = vsub.f32 1.0, %v2340_v61  ;;  %v1369_v1 = vmul.f32 %v2340_v61, %v2964_v33  ;;  %v1462_v33 = vld [vmem:[#allocation11 + $0x148] sm:$0xff] }
 0x4b7   : > { %v1470_v59 = vld [vmem:[%s3083_s13] sm:$0x7] }
 0x4b8   : > { %2341 = vtanh.f32 %v1365_v60  ;;  %v1475_v60 = vrot.slane %v1469_v57, %v2992_v25  ;;  %v1632_v61 = vrot.slane %v1470_v59, %v2992_v25 }
 0x4c5   : > { %v2342_v63 = vpop.eup %2341 }
 0x4c6   : > { %v1368_v0 = vmul.f32 %v2342_v63, %v1367_v62 }
 0x4c8   : > { %v1370_v2 = vadd.f32 %v1369_v1, %v1368_v0  ;;  %v1636_v1 = vrot.slane %v1470_v59, %v3002_v32 }
 0x4ca   : > { %1371 = vst [vmem:[#allocation13] sm:$0xff] %v1370_v2  ;;  %1552 = vmatmul.mubr.f32.vlgmr.msra.gmra.mxu0 %v1370_v2  ;;  %2201 = vmatmul.mubr.f32.vlgmr.msra.gmra.mxu1 %v1370_v2 }
 0x4cb   : > { %1645 = vmatpush1.msra.mxu0 %v1466_v3  ;;  %1708 = vmatprep.mubr.f32.mxu0 %v2545_v50 }
 0x4cc   : > { %1646 = vmatprep.subr.mxu0 %v1464_v4  ;;  %2204 = vmatpush3.msra.mxu1 %v1468_v5  ;;  %v1479_v4 = vrot.slane %v1469_v57, %v3002_v32 }
 0x4cd   : > { %1647 = vmatpush1.msra.mxu0 %v1463_v6  ;;  %2205 = vmatprep.subr.mxu1 %v2545_v50 }
 0x4ce   : > { %1648 = vmatprep.subr.mxu0 %v1461_v7  ;;  %2206 = vmatpush3.msra.mxu1 %v1465_v8 }
 0x4cf   : > { %1649 = vmatpush1.msra.mxu0 %v1460_v9  ;;  %2207 = vmatprep.subr.mxu1 %v2545_v50 }
 0x4d0   : > { %1650 = vmatprep.subr.mxu0 %v1458_v10  ;;  %2208 = vmatpush3.msra.mxu1 %v1462_v33 }
 0x4d1   : > { %1651 = vmatpush1.msra.mxu0 %v1457_v11  ;;  %2209 = vmatprep.subr.mxu1 %v2545_v50 }
 0x4d2   : > { %1652 = vmatprep.subr.mxu0 %v1455_v12  ;;  %2210 = vmatpush3.msra.mxu1 %v1459_v13  ;;  %v1640_v12 = vrot.slane %v1470_v59, %v3006_v51 }
 0x4d3   : > { %1653 = vmatpush1.msra.mxu0 %v1454_v14  ;;  %2211 = vmatprep.subr.mxu1 %v2545_v50  ;;  %v1483_v14 = vrot.slane %v1469_v57, %v3006_v51 }
 0x4d4   : > { %1654 = vmatprep.subr.mxu0 %v1452_v15  ;;  %2212 = vmatpush3.msra.mxu1 %v1456_v16 }
 0x4d5   : > { %1655 = vmatpush1.msra.mxu0 %v1451_v17  ;;  %2213 = vmatprep.subr.mxu1 %v2545_v50 }
 0x4d6   : > { %1656 = vmatprep.subr.mxu0 %v1449_v18  ;;  %2214 = vmatpush3.msra.mxu1 %v1453_v19 }
 0x4d7   : > { %1657 = vmatpush1.msra.mxu0 %v1448_v20  ;;  %2215 = vmatprep.subr.mxu1 %v2545_v50 }
 0x4d8   : > { %1658 = vmatprep.subr.mxu0 %v1446_v21  ;;  %2216 = vmatpush3.msra.mxu1 %v1450_v22 }
 0x4d9   : > { %1659 = vmatpush1.msra.mxu0 %v1445_v23  ;;  %2217 = vmatprep.subr.mxu1 %v2545_v50 }
 0x4da   : > { %1660 = vmatprep.subr.mxu0 %v1443_v24  ;;  %2218 = vmatpush3.msra.mxu1 %v1447_v26 }
 0x4db   : > { %1661 = vmatpush1.msra.mxu0 %v1442_v27  ;;  %2219 = vmatprep.subr.mxu1 %v2545_v50 }
 0x4dc   : > { %1662 = vmatprep.subr.mxu0 %v1440_v28  ;;  %2220 = vmatpush3.msra.mxu1 %v1444_v29 }
 0x4dd   : > { %1663 = vmatpush1.msra.mxu0 %v1439_v30  ;;  %2221 = vmatprep.subr.mxu1 %v2545_v50 }
 0x4de   : > { %1664 = vmatprep.subr.mxu0 %v1437_v31  ;;  %2222 = vmatpush3.msra.mxu1 %v1441_v34 }
 0x4df   : > { %1665 = vmatpush1.msra.mxu0 %v1436_v36  ;;  %2223 = vmatprep.subr.mxu1 %v2545_v50 }
 0x4e0   : > { %1666 = vmatprep.subr.mxu0 %v1434_v39  ;;  %2224 = vmatpush3.msra.mxu1 %v1438_v40 }
 0x4e1   : > { %1667 = vmatpush1.msra.mxu0 %v1433_v41  ;;  %2225 = vmatprep.subr.mxu1 %v2545_v50 }
 0x4e2   : > { %1668 = vmatprep.subr.mxu0 %v1431_v42  ;;  %2226 = vmatpush3.msra.mxu1 %v1435_v43 }
 0x4e3   : > { %1669 = vmatpush1.msra.mxu0 %v1430_v44  ;;  %2227 = vmatprep.subr.mxu1 %v2545_v50 }
 0x4e4   : > { %1670 = vmatprep.subr.mxu0 %v1428_v45  ;;  %2228 = vmatpush3.msra.mxu1 %v1432_v46 }
 0x4e5   : > { %1671 = vmatpush1.msra.mxu0 %v1427_v47  ;;  %2229 = vmatprep.subr.mxu1 %v2545_v50 }
 0x4e6   : > { %1672 = vmatprep.subr.mxu0 %v1425_v48  ;;  %2230 = vmatpush3.msra.mxu1 %v1429_v35 }
 0x4e7   : > { %1673 = vmatpush1.msra.mxu0 %v1424_v49  ;;  %2231 = vmatprep.subr.mxu1 %v2545_v50 }
 0x4e8   : > { %1674 = vmatprep.subr.mxu0 %v1422_v37  ;;  %2232 = vmatpush3.msra.mxu1 %v1426_v38 }
 0x4e9   : > { %1675 = vmatpush1.msra.mxu0 %v1421_v52  ;;  %2233 = vmatprep.subr.mxu1 %v2545_v50 }
 0x4ea   : > { %1709 = vmatmul.mubr.f32.vlgmr.msra.gmra.mxu0 %v1943_v53  ;;  %2234 = vmatpush3.msra.mxu1 %v1423_v54 }
 0x4eb   : > { %2235 = vmatprep.mubr.msk.f32.mxu1 %vm2547_vm8, %v2545_v50 }
 0x4ec   : > { %2236 = vmatmul.mubr.f32.vlgmr.msra.gmra.mxu1 %v1943_v53 }
 0x58a   : > { %v1624_v55 = vpop.f32.mrf.mxu1  ;;  %v1553_v58 = vpop.f32.mrf.mxu0 }
 0x58b   : > { %v1554_v0 = vadd.f32 %v1553_v58, %v1475_v60  ;;  %v1625_v17 = vadd.f32 %v1624_v55, %v1483_v14 }
 0x58c   : > { %v2202_v56 = vpop.f32.mrf.mxu1  ;;  %v1555_v62 = vpop.f32.mrf.mxu0 }
 0x58d   : > { %v1556_v9 = vadd.f32 %v1555_v62, %v1479_v4 }
 0x5aa   : > { %v1710_v63 = vpop.f32.mrf.mxu0 }
 0x5ab   : > { %v1711_v50 = vadd.f32 %v1710_v63, %v1632_v61 }
 0x5ac   : > { %v1712_v2 = vpop.f32.mrf.mxu0  ;;  %v1781_v3 = vpop.f32.mrf.mxu1 }
 0x5ad   : > { %v1785_v5 = vadd.f32 %v1711_v50, %v1554_v0  ;;  %v1713_v8 = vadd.f32 %v1712_v2, %v1636_v1  ;;  %v1782_v16 = vadd.f32 %v1781_v3, %v1640_v12 }
 0x5ae   : > { %v2237_v6 = vpop.f32.mrf.mxu1 }
 0x5af   : > { %v1944_v7 = vmul.f32 -1.442695, %v1785_v5  ;;  %v1792_v10 = vadd.f32 %v1713_v8, %v1556_v9 }
 0x5b1   : > { %2343 = vpow2.f32 %v1944_v7  ;;  %v1945_v33 = vmul.f32 -1.442695, %v1792_v10 }
 0x5b3   : > { %2345 = vpow2.f32 %v1945_v33 }
 0x5be   : > { %v2344_v25 = vpop.eup %2343 }
 0x5bf   : > { %v1789_v11 = vadd.f32 1.0, %v2344_v25 }
 0x5c0   : > { %v2346_v13 = vpop.eup %2345 }
 0x5c1   : > { %2347 = vrcp.f32 %v1789_v11  ;;  %v1796_v15 = vadd.f32 1.0, %v2346_v13 }
 0x5c3   : > { %2349 = vrcp.f32 %v1796_v15 }
 0x5ce   : > { %v2348_v32 = vpop.eup %2347 }
 0x5cf   : > { %v1799_v18 = vmul.f32 %v2348_v32, %v1782_v16 }
 0x5d0   : > { %v2350_v20 = vpop.eup %2349 }
 0x5d1   : > { %v1800_v19 = vadd.f32 %v1799_v18, %v1625_v17  ;;  %v1802_v21 = vsub.f32 1.0, %v2350_v20  ;;  %v1804_v23 = vmul.f32 %v2350_v20, %v1943_v53 }
 0x5d3   : > { %2351 = vtanh.f32 %v1800_v19 }
 0x5e0   : > { %v2352_v22 = vpop.eup %2351 }
 0x5e1   : > { %v1803_v24 = vmul.f32 %v2352_v22, %v1802_v21 }
 0x5e3   : > { %v1805_v26 = vadd.f32 %v1804_v23, %v1803_v24 }
 0x5e5   : > { %1807 = vst [vmem:[#allocation13 + $0x8] sm:$0xff] %v1805_v26  ;;  %1808 = vst [vmem:[#allocation14] sm:$0xff] %v1805_v26 }
 0x5e6 PF: > { %p2283_p3 = scmp.eq.s32.totalorder %s2638_s19, 2  ;;  %s2548_s23 = smov [#allocation13]  }
 0x5e7   : > { %s1815_s26 = sshll.u32 %s2548_s23, 4  ;;  %s1816_s26 = int_to_ptr.vmem [resolvable:$true] %s1815_s26 }
 0x5e8   : > { %s2457_s28 = scalar_lea.vmem %s1816_s26, 256  ;;  %p2464_p10 = scmp.lt.s32.totalorder %s1816_s26, %s1816_s26 }
 0x5e9   : > { %p2458_p6 = scmp.ne.s32.totalorder %s1816_s26, %s2457_s28  ;;  %p2465_p11 = scmp.lt.s32.totalorder %s2457_s28, %s2457_s28 }
 0x5eb   : > { %p2459_p7 = pnand %p2458_p6, %p2283_p3  ;;  %p2466_p12 = por %p2465_p11, %p2464_p10 }
 0x5ed   : > { %p2460_p9 = pneg %p2459_p7 }
 0x5ef   : > { %p2467_p13 = pnand %p2466_p12, %p2460_p9 }
 0x5f1   : > { %2470 = shalt.err (!%p2467_p13)
}
 0x5f2   : > { %s2549_s25 = smov 128   ;;  %s2550_s27 = smov 8  }
 0x5f3   : > { %2255 = dma.vmem_to_hbm [thread:$0]  (%p2283_p3), %s1816_s26, 256, %s3084_s14, [#allocation7], %s2549_s25, %s2549_s25, %s2550_s27  }
 0x5f4   : > { %s2551_s22 = smov [#allocation14]  }
 0x5f5   : > { %s1829_s30 = sshll.u32 %s2551_s22, 4  ;;  %s1830_s30 = int_to_ptr.vmem [resolvable:$true] %s1829_s30 }
 0x5f6   : > { %s2481_s21 = scalar_lea.vmem %s1830_s30, 128  ;;  %p2488_p8 = scmp.lt.s32.totalorder %s1830_s30, %s1830_s30 }
 0x5f7   : > { %p2482_p0 = scmp.ne.s32.totalorder %s1830_s30, %s2481_s21  ;;  %p2489_p4 = scmp.lt.s32.totalorder %s2481_s21, %s2481_s21 }
 0x5f9   : > { %p2483_p1 = pnand %p2482_p0, %p2283_p3  ;;  %p2490_p2 = por %p2489_p4, %p2488_p8 }
 0x5fb   : > { %p2484_p5 = pneg %p2483_p1 }
 0x5fd   : > { %p2491_p6 = pnand %p2490_p2, %p2484_p5 }
 0x5ff   : > { %2494 = shalt.err (!%p2491_p6)
}
 0x600   : > { %2257 = dma.vmem_to_hbm [thread:$0]  (%p2283_p3), %s1830_s30, 128, %s3085_s15, [#allocation15]  }
 0x601   : > { %2522 = dma.done.wait (%p2283_p3), [#allocation7], 256  }
 0x602   : > { %2524 = vsyncadd (%p2283_p3), [#allocation7], 4294967040 }
 0x603   : > { %2526 = dma.done.wait (%p2283_p3), [#allocation15], 128  }
 0x604   : > { %2528 = vsyncadd (%p2283_p3), [#allocation15], 4294967168 }
 0x605 PF: > { %s31_s18 = sadd.s32 1, %s2531_s18  }
 0x606   : > { %p28_p7 = scmp.ge.s32.totalorder %s31_s18, 5  }
 0x608   :  { %30 = sbr.rel (!%p28_p7) target bundleno = 5 (0x5), region = 138 }
 0x60d   :  { %1846 = vsyncpa [#allocation6], 1 }
 0x60e   :  { %1848 = vsyncpa [#allocation6 + $0x1], 1 }
 0x60f   :  { %1849 = vsyncpa [#allocation9], 1 }
 0x610   :  { %1850 = vsyncpa [#allocation12], 1 }
 0x611   :  { %1851 = vsyncpa [#allocation7], 1 }
 0x612   :  { %1853 = vsyncpa [#allocation7 + $0x1], 1 }
 0x613   :  { %1854 = vsyncpa [#allocation15], 1 }

</bundles_post_ra>
